<compile_context>
chip_gen: v5e
topology: v5e:2x2
jax: 0.10.0
libtpu: 0.0.40
codegen_flags: <defaults>
</compile_context>

<pallas_src>
import jax
import jax.numpy as jnp
from jax.experimental import pallas as pl
from jax.experimental.pallas import tpu as pltpu

# ---- small model configuration (LMDA defaults scaled down) ----
B = 2
CHANS = 8           # EEG channels (chans)
SAMPLES = 64        # time samples
DEPTH = 4           # depth of channel_weight
KERNEL = 9          # temporal kernel length of the depthwise (1, K) conv
CH_D1 = 8           # channel_depth1
CH_D2 = 4           # channel_depth2
AVEPOOL = 5
ATT_K = 7           # EEGDepthAttention kernel size
MLP_FEAT = 5
HIDDEN = 64
NUM_CLASSES = 4

W1 = SAMPLES - KERNEL + 1     # 56: width after 'valid' (1, KERNEL) depthwise conv
WP = W1 // AVEPOOL            # 11: width after AvgPool3d((1, 1, AVEPOOL))
BN_EPS = 1e-5

ROWS = CH_D1 * CHANS          # stacked (feature-map, eeg-channel) rows = 64
LANES = B * SAMPLES           # batch folded into the lane axis = 128
assert LANES == 128 and KERNEL - 1 + W1 <= SAMPLES

# ---- packed constant-slab row offsets (all sublane-aligned to 8) ----
R_WMIX = 0                    # (CH_D1, CHANS)   cols 0..CHANS-1
R_WDW = 8                     # (CH_D1, KERNEL)  cols 0..KERNEL-1, bias_t at col KERNEL
R_MCOMB = 16                  # (CH_D1, ROWS)    cols 0..ROWS-1
R_WCOMB = 24                  # (CH_D2, ROWS)    cols 0..ROWS-1, bcomb at col ROWS
R_G3 = 32                     # CH_D2 groups of 8 rows, first MLP_FEAT rows used, 128 cols
R_WH = R_G3 + 8 * CH_D2       # 64:  (HIDDEN, MLP_FEAT), b_h at col MLP_FEAT
R_WO = R_WH + HIDDEN          # 128: (NUM_CLASSES, HIDDEN), b_o at col HIDDEN
R_BFC1 = R_WO + 8             # 136: (MLP_FEAT, 1)
N_CROWS = R_BFC1 + 8          # 144


def _gelu(x):
    # tanh-approximate GELU: most of the cost goes to the EUP slot instead of the
    # saturating VALU slot; max abs deviation from exact-erf GELU ~1e-3.
    return 0.5 * x * (1.0 + jnp.tanh(0.7978845608028654 * (x + 0.044715 * x * x * x)))


# ---------------- the fused Pallas kernel (whole batch, one invocation, no grid) ----------------
def lmda_kernel(x_ref, c_ref, out_ref):
    f32 = jnp.float32
    x = x_ref[...]                                                    # (CHANS, LANES)

    wmix = c_ref[R_WMIX:R_WMIX + CH_D1, 0:CHANS]                      # (CH_D1, CHANS)
    wdw = c_ref[R_WDW:R_WDW + CH_D1, 0:KERNEL]                        # (CH_D1, KERNEL)
    biast = c_ref[R_WDW:R_WDW + CH_D1, KERNEL:KERNEL + 1]             # (CH_D1, 1)

    # depthwise (1,K) valid temporal conv (+BN2 fold): K lane-rotated FMAs.
    # Rotations wrap across the two 64-lane batch blocks only in the K-1 tail lanes,
    # which are never part of the W1 valid outputs and are masked out downstream.
    acc = wdw[:, 0:1][:, :, None] * x[None, :, :]                     # (CH_D1, CHANS, LANES)
    for k in range(1, KERNEL):
        xs = pltpu.roll(x, LANES - k, axis=1)                         # rolled[l] = x[l + k]
        acc = acc + wdw[:, k:k + 1][:, :, None] * xs[None, :, :]

    # channel_weight + 1x1 time conv + BN1 folded into wmix; BN1 offset carried in biast.
    xt3 = _gelu(wmix[:, :, None] * acc + biast[:, :, None])           # (CH_D1, CHANS, LANES)
    xt2 = xt3.reshape(ROWS, LANES)

    # EEGDepthAttention: mean-over-chans + (k,1) depth conv folded into one (8,64) matrix,
    # single MXU matmul at full 128-lane width, softmax over the depth (sublane) axis.
    mcomb = c_ref[R_MCOMB:R_MCOMB + CH_D1, 0:ROWS]
    y = jnp.dot(mcomb, xt2, preferred_element_type=f32)               # (CH_D1, LANES)
    e = jnp.exp(y - jnp.max(y, axis=0, keepdims=True))
    att = e * pl.reciprocal(jnp.sum(e, axis=0, keepdims=True), approx=True)
    xa2 = (xt3 * att[:, None, :]).reshape(ROWS, LANES)

    # chanel_conv (1x1 + BN3 + (chans,1) depthwise + BN4, *CH_D1 factor): one (4,64) matmul.
    wcomb = c_ref[R_WCOMB:R_WCOMB + CH_D2, 0:ROWS]
    bcomb = c_ref[R_WCOMB:R_WCOMB + CH_D2, ROWS:ROWS + 1]
    z = _gelu(jnp.dot(wcomb, xa2, preferred_element_type=f32) + bcomb)  # (CH_D2, LANES)

    # AvgPool3d((1,1,AVEPOOL)) + fc1: per-lane fc1 weights (zero on invalid lanes) applied
    # on the VPU, then ONE matmul against the batch-block selector collapses the lane axis.
    u = jnp.zeros((MLP_FEAT, LANES), f32)
    for p2 in range(CH_D2):
        g = c_ref[R_G3 + 8 * p2:R_G3 + 8 * p2 + MLP_FEAT, :]          # (MLP_FEAT, LANES)
        u = u + g * z[p2:p2 + 1, :]
    lane = jax.lax.broadcasted_iota(jnp.int32, (LANES, B), 0)
    bidx = jax.lax.broadcasted_iota(jnp.int32, (LANES, B), 1)
    sel = ((lane >= SAMPLES).astype(jnp.int32) == bidx).astype(f32)   # (LANES, B)
    bfc1 = c_ref[R_BFC1:R_BFC1 + MLP_FEAT, 0:1]
    f1t = jnp.dot(u, sel, preferred_element_type=f32) + bfc1          # (MLP_FEAT, B)

    # MLP head (Linear -> ELU -> Linear) + softmax, kept in (features, batch) orientation
    # so no in-kernel transposes are needed (PyTorch weight layout is already transposed).
    wh = c_ref[R_WH:R_WH + HIDDEN, 0:MLP_FEAT]
    bh = c_ref[R_WH:R_WH + HIDDEN, MLP_FEAT:MLP_FEAT + 1]
    ht = jnp.dot(wh, f1t, preferred_element_type=f32) + bh            # (HIDDEN, B)
    # ELU; exp(min(x,0))-1 instead of expm1 (expm1 lowering support is uncertain; err < 1e-7 here).
    ht = jnp.where(ht > 0.0, ht, jnp.exp(jnp.minimum(ht, 0.0)) - 1.0)
    wo = c_ref[R_WO:R_WO + NUM_CLASSES, 0:HIDDEN]
    bo = c_ref[R_WO:R_WO + NUM_CLASSES, HIDDEN:HIDDEN + 1]
    lt = jnp.dot(wo, ht, preferred_element_type=f32) + bo             # (NUM_CLASSES, B)
    ex = jnp.exp(lt - jnp.max(lt, axis=0, keepdims=True))
    out_ref[...] = ex * pl.reciprocal(jnp.sum(ex, axis=0, keepdims=True), approx=True)


# ---------------- wrapper: trace-time algebraic folding + slab packing + pallas_call ----------------
def lmda_pallas(x, p):
    f32 = jnp.float32
    hi = jax.lax.Precision.HIGHEST   # trace-time folds only (tiny, outside the kernel)

    # channel_weight einsum + 1x1 time_conv + BN1 -> per-(feature, chan) scale
    wmix = p['s1'][:, None] * jnp.dot(p['w_pt1'], p['cw'], precision=hi)          # (CH_D1, CHANS)
    # depthwise temporal taps with BN2 folded; BN1 offset becomes a per-feature constant
    wdw_eff = p['s2'][:, None] * p['w_dw']                                        # (CH_D1, KERNEL)
    bias_t = p['s2'] * p['t1'] * jnp.sum(p['w_dw'], axis=1) + p['t2']             # (CH_D1,)

    # depth attention: mean-over-chans + (ATT_K,1) zero-padded depth conv as one matrix
    # (the conv bias shifts every depth position equally -> softmax-invariant, dropped)
    o_i = jnp.arange(CH_D1)[:, None]
    q_i = jnp.arange(CH_D1)[None, :]
    j = q_i - o_i + ATT_K // 2
    aband = jnp.where((j >= 0) & (j < ATT_K), p['att_w'][jnp.clip(j, 0, ATT_K - 1)], 0.0)
    pmean = jnp.kron(jnp.eye(CH_D1, dtype=f32), jnp.full((1, CHANS), 1.0 / CHANS, f32))
    mcomb = jnp.dot(aband, pmean, precision=hi)                                   # (CH_D1, ROWS)

    # chanel_conv (1x1 + BN3 + (chans,1) depthwise + BN4) and the *CH_D1 attention factor
    wcomb = ((p['s4'] * p['s3'] * float(CH_D1))[:, None, None]
             * p['w_pt2'][:, :, None] * p['w_sp'][:, None, :]).reshape(CH_D2, ROWS)
    bcomb = p['s4'] * p['t3'] * jnp.sum(p['w_sp'], axis=1) + p['t4']              # (CH_D2,)

    # AvgPool3d((1,1,AVEPOOL)) + fc1 fold, pre-tiled per 64-lane batch block
    w_idx = jnp.arange(W1)[:, None]
    t_idx = jnp.arange(WP)[None, :]
    pmat = jnp.where((w_idx >= t_idx * AVEPOOL) & (w_idx < (t_idx + 1) * AVEPOOL),
                     1.0 / AVEPOOL, 0.0).astype(f32)                              # (W1, WP)
    wfc1_r = p['w_fc1'].reshape(MLP_FEAT, CH_D2, WP).transpose(1, 2, 0)           # (CH_D2, WP, M)
    gmat = jnp.einsum('wt,ptm->pwm', pmat, wfc1_r, precision=hi)                  # (CH_D2, W1, M)
    gpad = jnp.pad(gmat, ((0, 0), (0, SAMPLES - W1), (0, 0)))                     # zero invalid lanes
    gfull = jnp.transpose(jnp.tile(gpad, (1, B, 1)), (0, 2, 1))                   # (CH_D2, M, LANES)

    # pack every constant into ONE lane-dense (N_CROWS, 128) slab -> a single DMA
    cst = jnp.zeros((N_CROWS, LANES), f32)

    def put(s, arr, r, c):
        return s.at[r:r + arr.shape[0], c:c + arr.shape[1]].set(arr.astype(f32))

    cst = put(cst, wmix, R_WMIX, 0)
    cst = put(cst, wdw_eff, R_WDW, 0)
    cst = put(cst, bias_t[:, None], R_WDW, KERNEL)
    cst = put(cst, mcomb, R_MCOMB, 0)
    cst = put(cst, wcomb, R_WCOMB, 0)
    cst = put(cst, bcomb[:, None], R_WCOMB, ROWS)
    for p2 in range(CH_D2):
        cst = put(cst, gfull[p2], R_G3 + 8 * p2, 0)
    cst = put(cst, p['w_h'], R_WH, 0)
    cst = put(cst, p['b_h'][:, None], R_WH, MLP_FEAT)
    cst = put(cst, p['w_o'], R_WO, 0)
    cst = put(cst, p['b_o'][:, None], R_WO, HIDDEN)
    cst = put(cst, p['b_fc1'][:, None], R_BFC1, 0)

    # fold the batch into the lane axis: (B, 1, CHANS, SAMPLES) -> (CHANS, B*SAMPLES)
    x2 = jnp.transpose(x[:, 0], (1, 0, 2)).reshape(CHANS, LANES)

    vmem = pl.BlockSpec(memory_space=pltpu.MemorySpace.VMEM)
    probs_t = pl.pallas_call(
        lmda_kernel,
        out_shape=jax.ShapeDtypeStruct((NUM_CLASSES, B), jnp.float32),
        in_specs=[vmem, vmem],
        out_specs=vmem,
    )(x2, cst)
    return probs_t.T                                                  # (B, NUM_CLASSES)


# ---------------- deterministic parameter init (BN folded to eval-mode affine) ----------------
def init_params(key):
    ks = jax.random.split(key, 24)

    def nrm(i, shape, s=0.3):
        return s * jax.random.normal(ks[i], shape, jnp.float32)

    def bn(i, c):
        g = 1.0 + 0.1 * jax.random.normal(ks[i], (c,), jnp.float32)
        b = 0.1 * jax.random.normal(jax.random.fold_in(ks[i], 1), (c,), jnp.float32)
        m = 0.1 * jax.random.normal(jax.random.fold_in(ks[i], 2), (c,), jnp.float32)
        v = 0.5 + jax.random.uniform(jax.random.fold_in(ks[i], 3), (c,), jnp.float32)
        s = g / jnp.sqrt(v + BN_EPS)
        return s, b - m * s

    p = {}
    p['cw'] = nrm(0, (DEPTH, CHANS), 0.4)                 # channel_weight (depth, 1, chans)
    p['w_pt1'] = nrm(1, (CH_D1, DEPTH), 0.4)
    p['s1'], p['t1'] = bn(2, CH_D1)
    p['w_dw'] = nrm(3, (CH_D1, KERNEL), 0.3)
    p['s2'], p['t2'] = bn(4, CH_D1)
    p['att_w'] = nrm(5, (ATT_K,), 0.4)
    p['att_b'] = nrm(6, (1,), 0.1)
    p['w_pt2'] = nrm(7, (CH_D2, CH_D1), 0.3)
    p['s3'], p['t3'] = bn(8, CH_D2)
    p['w_sp'] = nrm(9, (CH_D2, CHANS), 0.3)
    p['s4'], p['t4'] = bn(10, CH_D2)
    p['w_fc1'] = nrm(11, (MLP_FEAT, CH_D2 * WP), 0.25)
    p['b_fc1'] = nrm(12, (MLP_FEAT,), 0.1)
    p['w_h'] = nrm(13, (HIDDEN, MLP_FEAT), 0.25)
    p['b_h'] = nrm(14, (HIDDEN,), 0.1)
    p['w_o'] = nrm(15, (NUM_CLASSES, HIDDEN), 0.2)
    p['b_o'] = nrm(16, (NUM_CLASSES,), 0.1)
    return p


# ---------------- pure-JAX reference (mirrors the PyTorch forward, eval mode) ----------------
def reference_forward(x, p):
    prec = jax.lax.Precision.HIGHEST
    bsz = x.shape[0]
    xe = jnp.einsum('bcw,hc->bhcw', x[:, 0], p['cw'], precision=prec)
    y = jnp.einsum('oh,bhcw->bocw', p['w_pt1'], xe, precision=prec)
    y = y * p['s1'][None, :, None, None] + p['t1'][None, :, None, None]
    yd = jnp.zeros(y.shape[:-1] + (W1,), jnp.float32)
    for k in range(KERNEL):
        yd = yd + p['w_dw'][:, k][None, :, None, None] * y[..., k:k + W1]
    yd = yd * p['s2'][None, :, None, None] + p['t2'][None, :, None, None]
    xt = jax.nn.gelu(yd, approximate=False)

    pool = jnp.mean(xt, axis=2, keepdims=True)                  # (B, CH_D1, 1, W1)
    pt = jnp.transpose(pool, (0, 2, 1, 3))                      # (B, 1, CH_D1, W1)
    ptp = jnp.pad(pt, ((0, 0), (0, 0), (ATT_K // 2, ATT_K // 2), (0, 0)))
    conv = jnp.zeros_like(pt)
    for j in range(ATT_K):
        conv = conv + p['att_w'][j] * ptp[:, :, j:j + CH_D1, :]
    conv = conv + p['att_b'][0]
    att = jax.nn.softmax(conv, axis=-2)
    att = jnp.transpose(att, (0, 2, 1, 3))
    xa = att * float(CH_D1) * xt

    z = jnp.einsum('po,bocw->bpcw', p['w_pt2'], xa, precision=prec)
    z = z * p['s3'][None, :, None, None] + p['t3'][None, :, None, None]
    zs = jnp.einsum('pc,bpcw->bpw', p['w_sp'], z, precision=prec)
    zs = zs * p['s4'][None, :, None] + p['t4'][None, :, None]
    zs = jax.nn.gelu(zs, approximate=False)

    pooled = zs[..., :WP * AVEPOOL].reshape(bsz, CH_D2, WP, AVEPOOL).mean(-1)
    feat = pooled.reshape(bsz, CH_D2 * WP)
    f1 = jnp.dot(feat, p['w_fc1'].T, precision=prec) + p['b_fc1']
    h = jnp.dot(f1, p['w_h'].T, precision=prec) + p['b_h']
    h = jnp.where(h > 0, h, jnp.expm1(jnp.minimum(h, 0.0)))
    logits = jnp.dot(h, p['w_o'].T, precision=prec) + p['b_o']
    return jax.nn.softmax(logits, axis=1)


if __name__ == "__main__":
    key = jax.random.PRNGKey(0)
    kx, kp = jax.random.split(key)
    x = jax.random.normal(kx, (B, 1, CHANS, SAMPLES), jnp.float32)
    params = init_params(kp)

    out = jax.block_until_ready(jax.jit(lmda_pallas)(x, params))
    ref = jax.block_until_ready(reference_forward(x, params))

    err = float(jnp.max(jnp.abs(out - ref)))
    assert out.shape == (B, NUM_CLASSES), out.shape
    # Kernel matmuls run at default (single bf16 pass) MXU precision, GELU is the tanh
    # approximation and softmax denominators use approx reciprocals (per perf guidance);
    # tolerance sized accordingly vs. the full-f32 exact-erf reference.
    assert err < 2e-2, f"kernel/reference mismatch: max abs err = {err}"
    print("KERNEL_OK")
</pallas_src>

<mosaic_0001>
module attributes {stable_mosaic.version = 11 : i64} {
  func.func @lmda_kernel(%arg0: memref<8x128xf32, #tpu.memory_space<vmem>>, %arg1: memref<144x128xf32, #tpu.memory_space<vmem>>, %arg2: memref<4x2xf32, #tpu.memory_space<vmem>>) attributes {dimension_semantics = [], scalar_prefetch = 0 : i64, scratch_operands = 0 : i64, tpu.core_type = #tpu.core_type<tc>} {
    %c0 = arith.constant 0 : index
    %c0_0 = arith.constant 0 : index
    %0 = vector.load %arg0[%c0, %c0_0] : memref<8x128xf32, #tpu.memory_space<vmem>>, vector<8x128xf32>
    %c0_1 = arith.constant 0 : index
    %c0_2 = arith.constant 0 : index
    %1 = vector.load %arg1[%c0_1, %c0_2] : memref<144x128xf32, #tpu.memory_space<vmem>>, vector<8x8xf32>
    %c8 = arith.constant 8 : index
    %c0_3 = arith.constant 0 : index
    %2 = vector.load %arg1[%c8, %c0_3] : memref<144x128xf32, #tpu.memory_space<vmem>>, vector<8x9xf32>
    %c8_4 = arith.constant 8 : index
    %c9 = arith.constant 9 : index
    %3 = vector.load %arg1[%c8_4, %c9] : memref<144x128xf32, #tpu.memory_space<vmem>>, vector<8x1xf32>
    %4 = vector.extract_strided_slice %2 {offsets = [0, 0], sizes = [8, 1], strides = [1, 1]} : vector<8x9xf32> to vector<8x1xf32>
    %5 = vector.shape_cast %4 : vector<8x1xf32> to vector<8x1x1xf32>
    %6 = vector.shape_cast %0 : vector<8x128xf32> to vector<1x8x128xf32>
    %7 = vector.broadcast %5 : vector<8x1x1xf32> to vector<8x8x128xf32>
    %8 = vector.broadcast %6 : vector<1x8x128xf32> to vector<8x8x128xf32>
    %9 = arith.mulf %7, %8 : vector<8x8x128xf32>
    %c127_i32 = arith.constant 127 : i32
    %10 = tpu.dynamic_rotate %0 by %c127_i32 dim 1 : vector<8x128xf32>, i32 -> vector<8x128xf32>
    %11 = vector.extract_strided_slice %2 {offsets = [0, 1], sizes = [8, 1], strides = [1, 1]} : vector<8x9xf32> to vector<8x1xf32>
    %12 = vector.shape_cast %11 : vector<8x1xf32> to vector<8x1x1xf32>
    %13 = vector.shape_cast %10 : vector<8x128xf32> to vector<1x8x128xf32>
    %14 = vector.broadcast %12 : vector<8x1x1xf32> to vector<8x8x128xf32>
    %15 = vector.broadcast %13 : vector<1x8x128xf32> to vector<8x8x128xf32>
    %16 = arith.mulf %14, %15 : vector<8x8x128xf32>
    %17 = arith.addf %9, %16 : vector<8x8x128xf32>
    %c126_i32 = arith.constant 126 : i32
    %18 = tpu.dynamic_rotate %0 by %c126_i32 dim 1 : vector<8x128xf32>, i32 -> vector<8x128xf32>
    %19 = vector.extract_strided_slice %2 {offsets = [0, 2], sizes = [8, 1], strides = [1, 1]} : vector<8x9xf32> to vector<8x1xf32>
    %20 = vector.shape_cast %19 : vector<8x1xf32> to vector<8x1x1xf32>
    %21 = vector.shape_cast %18 : vector<8x128xf32> to vector<1x8x128xf32>
    %22 = vector.broadcast %20 : vector<8x1x1xf32> to vector<8x8x128xf32>
    %23 = vector.broadcast %21 : vector<1x8x128xf32> to vector<8x8x128xf32>
    %24 = arith.mulf %22, %23 : vector<8x8x128xf32>
    %25 = arith.addf %17, %24 : vector<8x8x128xf32>
    %c125_i32 = arith.constant 125 : i32
    %26 = tpu.dynamic_rotate %0 by %c125_i32 dim 1 : vector<8x128xf32>, i32 -> vector<8x128xf32>
    %27 = vector.extract_strided_slice %2 {offsets = [0, 3], sizes = [8, 1], strides = [1, 1]} : vector<8x9xf32> to vector<8x1xf32>
    %28 = vector.shape_cast %27 : vector<8x1xf32> to vector<8x1x1xf32>
    %29 = vector.shape_cast %26 : vector<8x128xf32> to vector<1x8x128xf32>
    %30 = vector.broadcast %28 : vector<8x1x1xf32> to vector<8x8x128xf32>
    %31 = vector.broadcast %29 : vector<1x8x128xf32> to vector<8x8x128xf32>
    %32 = arith.mulf %30, %31 : vector<8x8x128xf32>
    %33 = arith.addf %25, %32 : vector<8x8x128xf32>
    %c124_i32 = arith.constant 124 : i32
    %34 = tpu.dynamic_rotate %0 by %c124_i32 dim 1 : vector<8x128xf32>, i32 -> vector<8x128xf32>
    %35 = vector.extract_strided_slice %2 {offsets = [0, 4], sizes = [8, 1], strides = [1, 1]} : vector<8x9xf32> to vector<8x1xf32>
    %36 = vector.shape_cast %35 : vector<8x1xf32> to vector<8x1x1xf32>
    %37 = vector.shape_cast %34 : vector<8x128xf32> to vector<1x8x128xf32>
    %38 = vector.broadcast %36 : vector<8x1x1xf32> to vector<8x8x128xf32>
    %39 = vector.broadcast %37 : vector<1x8x128xf32> to vector<8x8x128xf32>
    %40 = arith.mulf %38, %39 : vector<8x8x128xf32>
    %41 = arith.addf %33, %40 : vector<8x8x128xf32>
    %c123_i32 = arith.constant 123 : i32
    %42 = tpu.dynamic_rotate %0 by %c123_i32 dim 1 : vector<8x128xf32>, i32 -> vector<8x128xf32>
    %43 = vector.extract_strided_slice %2 {offsets = [0, 5], sizes = [8, 1], strides = [1, 1]} : vector<8x9xf32> to vector<8x1xf32>
    %44 = vector.shape_cast %43 : vector<8x1xf32> to vector<8x1x1xf32>
    %45 = vector.shape_cast %42 : vector<8x128xf32> to vector<1x8x128xf32>
    %46 = vector.broadcast %44 : vector<8x1x1xf32> to vector<8x8x128xf32>
    %47 = vector.broadcast %45 : vector<1x8x128xf32> to vector<8x8x128xf32>
    %48 = arith.mulf %46, %47 : vector<8x8x128xf32>
    %49 = arith.addf %41, %48 : vector<8x8x128xf32>
    %c122_i32 = arith.constant 122 : i32
    %50 = tpu.dynamic_rotate %0 by %c122_i32 dim 1 : vector<8x128xf32>, i32 -> vector<8x128xf32>
    %51 = vector.extract_strided_slice %2 {offsets = [0, 6], sizes = [8, 1], strides = [1, 1]} : vector<8x9xf32> to vector<8x1xf32>
    %52 = vector.shape_cast %51 : vector<8x1xf32> to vector<8x1x1xf32>
    %53 = vector.shape_cast %50 : vector<8x128xf32> to vector<1x8x128xf32>
    %54 = vector.broadcast %52 : vector<8x1x1xf32> to vector<8x8x128xf32>
    %55 = vector.broadcast %53 : vector<1x8x128xf32> to vector<8x8x128xf32>
    %56 = arith.mulf %54, %55 : vector<8x8x128xf32>
    %57 = arith.addf %49, %56 : vector<8x8x128xf32>
    %c121_i32 = arith.constant 121 : i32
    %58 = tpu.dynamic_rotate %0 by %c121_i32 dim 1 : vector<8x128xf32>, i32 -> vector<8x128xf32>
    %59 = vector.extract_strided_slice %2 {offsets = [0, 7], sizes = [8, 1], strides = [1, 1]} : vector<8x9xf32> to vector<8x1xf32>
    %60 = vector.shape_cast %59 : vector<8x1xf32> to vector<8x1x1xf32>
    %61 = vector.shape_cast %58 : vector<8x128xf32> to vector<1x8x128xf32>
    %62 = vector.broadcast %60 : vector<8x1x1xf32> to vector<8x8x128xf32>
    %63 = vector.broadcast %61 : vector<1x8x128xf32> to vector<8x8x128xf32>
    %64 = arith.mulf %62, %63 : vector<8x8x128xf32>
    %65 = arith.addf %57, %64 : vector<8x8x128xf32>
    %c120_i32 = arith.constant 120 : i32
    %66 = tpu.dynamic_rotate %0 by %c120_i32 dim 1 : vector<8x128xf32>, i32 -> vector<8x128xf32>
    %67 = vector.extract_strided_slice %2 {offsets = [0, 8], sizes = [8, 1], strides = [1, 1]} : vector<8x9xf32> to vector<8x1xf32>
    %68 = vector.shape_cast %67 : vector<8x1xf32> to vector<8x1x1xf32>
    %69 = vector.shape_cast %66 : vector<8x128xf32> to vector<1x8x128xf32>
    %70 = vector.broadcast %68 : vector<8x1x1xf32> to vector<8x8x128xf32>
    %71 = vector.broadcast %69 : vector<1x8x128xf32> to vector<8x8x128xf32>
    %72 = arith.mulf %70, %71 : vector<8x8x128xf32>
    %73 = arith.addf %65, %72 : vector<8x8x128xf32>
    %74 = vector.shape_cast %1 : vector<8x8xf32> to vector<8x8x1xf32>
    %75 = vector.broadcast %74 : vector<8x8x1xf32> to vector<8x8x128xf32>
    %76 = arith.mulf %75, %73 : vector<8x8x128xf32>
    %77 = vector.shape_cast %3 : vector<8x1xf32> to vector<8x1x1xf32>
    %78 = vector.broadcast %77 : vector<8x1x1xf32> to vector<8x8x128xf32>
    %79 = arith.addf %76, %78 : vector<8x8x128xf32>
    %cst = arith.constant 5.000000e-01 : f32
    %80 = vector.broadcast %cst : f32 to vector<8x8x128xf32>
    %81 = arith.mulf %80, %79 : vector<8x8x128xf32>
    %cst_5 = arith.constant 4.471500e-02 : f32
    %82 = vector.broadcast %cst_5 : f32 to vector<8x8x128xf32>
    %83 = arith.mulf %82, %79 : vector<8x8x128xf32>
    %84 = arith.mulf %83, %79 : vector<8x8x128xf32>
    %85 = arith.mulf %84, %79 : vector<8x8x128xf32>
    %86 = arith.addf %79, %85 : vector<8x8x128xf32>
    %cst_6 = arith.constant 0.797884583 : f32
    %87 = vector.broadcast %cst_6 : f32 to vector<8x8x128xf32>
    %88 = arith.mulf %87, %86 : vector<8x8x128xf32>
    %89 = math.tanh %88 : vector<8x8x128xf32>
    %cst_7 = arith.constant 1.000000e+00 : f32
    %90 = vector.broadcast %cst_7 : f32 to vector<8x8x128xf32>
    %91 = arith.addf %90, %89 : vector<8x8x128xf32>
    %92 = arith.mulf %81, %91 : vector<8x8x128xf32>
    %93 = vector.shape_cast %92 : vector<8x8x128xf32> to vector<64x128xf32>
    %c16 = arith.constant 16 : index
    %c0_8 = arith.constant 0 : index
    %94 = vector.load %arg1[%c16, %c0_8] : memref<144x128xf32, #tpu.memory_space<vmem>>, vector<8x64xf32>
    %cst_9 = arith.constant dense<0.000000e+00> : vector<8x128xf32>
    %95 = tpu.matmul %94, %93, %cst_9 {dimension_numbers = #tpu.dot_dimension_numbers<[1], [0], [0], [1], [0, 0, 1, 1], [], []>} : vector<8x64xf32>, vector<64x128xf32>, vector<8x128xf32> -> vector<8x128xf32>
    %cst_10 = arith.constant dense<0xFF800000> : vector<128xf32>
    %96 = vector.multi_reduction <maximumf>, %95, %cst_10 [0] : vector<8x128xf32> to vector<128xf32>
    %97 = vector.shape_cast %96 : vector<128xf32> to vector<1x128xf32>
    %98 = vector.broadcast %97 : vector<1x128xf32> to vector<8x128xf32>
    %99 = arith.subf %95, %98 : vector<8x128xf32>
    %100 = math.exp %99 : vector<8x128xf32>
    %cst_11 = arith.constant dense<0.000000e+00> : vector<128xf32>
    %101 = vector.multi_reduction <add>, %100, %cst_11 [0] : vector<8x128xf32> to vector<128xf32>
    %102 = vector.shape_cast %101 : vector<128xf32> to vector<1x128xf32>
    %103 = tpu.reciprocal %102 {approx = true} : vector<1x128xf32> -> vector<1x128xf32>
    %104 = vector.broadcast %103 : vector<1x128xf32> to vector<8x128xf32>
    %105 = arith.mulf %100, %104 : vector<8x128xf32>
    %106 = vector.shape_cast %105 : vector<8x128xf32> to vector<8x1x128xf32>
    %107 = vector.broadcast %106 : vector<8x1x128xf32> to vector<8x8x128xf32>
    %108 = arith.mulf %92, %107 : vector<8x8x128xf32>
    %109 = vector.shape_cast %108 : vector<8x8x128xf32> to vector<64x128xf32>
    %c24 = arith.constant 24 : index
    %c0_12 = arith.constant 0 : index
    %110 = vector.load %arg1[%c24, %c0_12] : memref<144x128xf32, #tpu.memory_space<vmem>>, vector<4x64xf32>
    %c24_13 = arith.constant 24 : index
    %c64 = arith.constant 64 : index
    %111 = vector.load %arg1[%c24_13, %c64] : memref<144x128xf32, #tpu.memory_space<vmem>>, vector<4x1xf32>
    %cst_14 = arith.constant dense<0.000000e+00> : vector<4x128xf32>
    %112 = tpu.matmul %110, %109, %cst_14 {dimension_numbers = #tpu.dot_dimension_numbers<[1], [0], [0], [1], [0, 0, 1, 1], [], []>} : vector<4x64xf32>, vector<64x128xf32>, vector<4x128xf32> -> vector<4x128xf32>
    %113 = vector.broadcast %111 : vector<4x1xf32> to vector<4x128xf32>
    %114 = arith.addf %112, %113 : vector<4x128xf32>
    %cst_15 = arith.constant 5.000000e-01 : f32
    %115 = vector.broadcast %cst_15 : f32 to vector<4x128xf32>
    %116 = arith.mulf %115, %114 : vector<4x128xf32>
    %cst_16 = arith.constant 4.471500e-02 : f32
    %117 = vector.broadcast %cst_16 : f32 to vector<4x128xf32>
    %118 = arith.mulf %117, %114 : vector<4x128xf32>
    %119 = arith.mulf %118, %114 : vector<4x128xf32>
    %120 = arith.mulf %119, %114 : vector<4x128xf32>
    %121 = arith.addf %114, %120 : vector<4x128xf32>
    %cst_17 = arith.constant 0.797884583 : f32
    %122 = vector.broadcast %cst_17 : f32 to vector<4x128xf32>
    %123 = arith.mulf %122, %121 : vector<4x128xf32>
    %124 = math.tanh %123 : vector<4x128xf32>
    %cst_18 = arith.constant 1.000000e+00 : f32
    %125 = vector.broadcast %cst_18 : f32 to vector<4x128xf32>
    %126 = arith.addf %125, %124 : vector<4x128xf32>
    %127 = arith.mulf %116, %126 : vector<4x128xf32>
    %cst_19 = arith.constant 0.000000e+00 : f32
    %128 = vector.broadcast %cst_19 : f32 to vector<5x128xf32>
    %c32 = arith.constant 32 : index
    %c0_20 = arith.constant 0 : index
    %129 = vector.load %arg1[%c32, %c0_20] : memref<144x128xf32, #tpu.memory_space<vmem>>, vector<5x128xf32>
    %130 = vector.extract_strided_slice %127 {offsets = [0, 0], sizes = [1, 128], strides = [1, 1]} : vector<4x128xf32> to vector<1x128xf32>
    %131 = vector.broadcast %130 : vector<1x128xf32> to vector<5x128xf32>
    %132 = arith.mulf %129, %131 : vector<5x128xf32>
    %133 = arith.addf %128, %132 : vector<5x128xf32>
    %c40 = arith.constant 40 : index
    %c0_21 = arith.constant 0 : index
    %134 = vector.load %arg1[%c40, %c0_21] : memref<144x128xf32, #tpu.memory_space<vmem>>, vector<5x128xf32>
    %135 = vector.extract_strided_slice %127 {offsets = [1, 0], sizes = [1, 128], strides = [1, 1]} : vector<4x128xf32> to vector<1x128xf32>
    %136 = vector.broadcast %135 : vector<1x128xf32> to vector<5x128xf32>
    %137 = arith.mulf %134, %136 : vector<5x128xf32>
    %138 = arith.addf %133, %137 : vector<5x128xf32>
    %c48 = arith.constant 48 : index
    %c0_22 = arith.constant 0 : index
    %139 = vector.load %arg1[%c48, %c0_22] : memref<144x128xf32, #tpu.memory_space<vmem>>, vector<5x128xf32>
    %140 = vector.extract_strided_slice %127 {offsets = [2, 0], sizes = [1, 128], strides = [1, 1]} : vector<4x128xf32> to vector<1x128xf32>
    %141 = vector.broadcast %140 : vector<1x128xf32> to vector<5x128xf32>
    %142 = arith.mulf %139, %141 : vector<5x128xf32>
    %143 = arith.addf %138, %142 : vector<5x128xf32>
    %c56 = arith.constant 56 : index
    %c0_23 = arith.constant 0 : index
    %144 = vector.load %arg1[%c56, %c0_23] : memref<144x128xf32, #tpu.memory_space<vmem>>, vector<5x128xf32>
    %145 = vector.extract_strided_slice %127 {offsets = [3, 0], sizes = [1, 128], strides = [1, 1]} : vector<4x128xf32> to vector<1x128xf32>
    %146 = vector.broadcast %145 : vector<1x128xf32> to vector<5x128xf32>
    %147 = arith.mulf %144, %146 : vector<5x128xf32>
    %148 = arith.addf %143, %147 : vector<5x128xf32>
    %149 = tpu.iota {dimensions = array<i32: 0>} : vector<128x2xi32>
    %150 = tpu.iota {dimensions = array<i32: 1>} : vector<128x2xi32>
    %c64_i32 = arith.constant 64 : i32
    %151 = vector.broadcast %c64_i32 : i32 to vector<128x2xi32>
    %152 = arith.cmpi sge, %149, %151 : vector<128x2xi32>
    %153 = arith.extui %152 : vector<128x2xi1> to vector<128x2xi32>
    %154 = arith.cmpi eq, %153, %150 : vector<128x2xi32>
    %155 = arith.extui %154 : vector<128x2xi1> to vector<128x2xi32>
    %156 = arith.sitofp %155 : vector<128x2xi32> to vector<128x2xf32>
    %c136 = arith.constant 136 : index
    %c0_24 = arith.constant 0 : index
    %157 = vector.load %arg1[%c136, %c0_24] : memref<144x128xf32, #tpu.memory_space<vmem>>, vector<5x1xf32>
    %cst_25 = arith.constant dense<0.000000e+00> : vector<5x2xf32>
    %158 = tpu.matmul %148, %156, %cst_25 {dimension_numbers = #tpu.dot_dimension_numbers<[1], [0], [0], [1], [0, 0, 1, 1], [], []>} : vector<5x128xf32>, vector<128x2xf32>, vector<5x2xf32> -> vector<5x2xf32>
    %159 = vector.broadcast %157 : vector<5x1xf32> to vector<5x2xf32>
    %160 = arith.addf %158, %159 : vector<5x2xf32>
    %c64_26 = arith.constant 64 : index
    %c0_27 = arith.constant 0 : index
    %161 = vector.load %arg1[%c64_26, %c0_27] : memref<144x128xf32, #tpu.memory_space<vmem>>, vector<64x5xf32>
    %c64_28 = arith.constant 64 : index
    %c5 = arith.constant 5 : index
    %162 = vector.load %arg1[%c64_28, %c5] : memref<144x128xf32, #tpu.memory_space<vmem>>, vector<64x1xf32>
    %cst_29 = arith.constant dense<0.000000e+00> : vector<64x2xf32>
    %163 = tpu.matmul %161, %160, %cst_29 {dimension_numbers = #tpu.dot_dimension_numbers<[1], [0], [0], [1], [0, 0, 1, 1], [], []>} : vector<64x5xf32>, vector<5x2xf32>, vector<64x2xf32> -> vector<64x2xf32>
    %164 = vector.broadcast %162 : vector<64x1xf32> to vector<64x2xf32>
    %165 = arith.addf %163, %164 : vector<64x2xf32>
    %cst_30 = arith.constant 0.000000e+00 : f32
    %166 = vector.broadcast %cst_30 : f32 to vector<64x2xf32>
    %167 = arith.cmpf ogt, %165, %166 : vector<64x2xf32>
    %cst_31 = arith.constant 0.000000e+00 : f32
    %168 = vector.broadcast %cst_31 : f32 to vector<64x2xf32>
    %169 = arith.minimumf %165, %168 : vector<64x2xf32>
    %170 = math.exp %169 : vector<64x2xf32>
    %cst_32 = arith.constant 1.000000e+00 : f32
    %171 = vector.broadcast %cst_32 : f32 to vector<64x2xf32>
    %172 = arith.subf %170, %171 : vector<64x2xf32>
    %173 = arith.select %167, %165, %172 : vector<64x2xi1>, vector<64x2xf32>
    %c128 = arith.constant 128 : index
    %c0_33 = arith.constant 0 : index
    %174 = vector.load %arg1[%c128, %c0_33] : memref<144x128xf32, #tpu.memory_space<vmem>>, vector<4x64xf32>
    %c128_34 = arith.constant 128 : index
    %c64_35 = arith.constant 64 : index
    %175 = vector.load %arg1[%c128_34, %c64_35] : memref<144x128xf32, #tpu.memory_space<vmem>>, vector<4x1xf32>
    %cst_36 = arith.constant dense<0.000000e+00> : vector<4x2xf32>
    %176 = tpu.matmul %174, %173, %cst_36 {dimension_numbers = #tpu.dot_dimension_numbers<[1], [0], [0], [1], [0, 0, 1, 1], [], []>} : vector<4x64xf32>, vector<64x2xf32>, vector<4x2xf32> -> vector<4x2xf32>
    %177 = vector.broadcast %175 : vector<4x1xf32> to vector<4x2xf32>
    %178 = arith.addf %176, %177 : vector<4x2xf32>
    %cst_37 = arith.constant dense<0xFF800000> : vector<2xf32>
    %179 = vector.multi_reduction <maximumf>, %178, %cst_37 [0] : vector<4x2xf32> to vector<2xf32>
    %180 = vector.shape_cast %179 : vector<2xf32> to vector<1x2xf32>
    %181 = vector.broadcast %180 : vector<1x2xf32> to vector<4x2xf32>
    %182 = arith.subf %178, %181 : vector<4x2xf32>
    %183 = math.exp %182 : vector<4x2xf32>
    %cst_38 = arith.constant dense<0.000000e+00> : vector<2xf32>
    %184 = vector.multi_reduction <add>, %183, %cst_38 [0] : vector<4x2xf32> to vector<2xf32>
    %185 = vector.shape_cast %184 : vector<2xf32> to vector<1x2xf32>
    %186 = tpu.reciprocal %185 {approx = true} : vector<1x2xf32> -> vector<1x2xf32>
    %187 = vector.broadcast %186 : vector<1x2xf32> to vector<4x2xf32>
    %188 = arith.mulf %183, %187 : vector<4x2xf32>
    %c0_39 = arith.constant 0 : index
    %c0_40 = arith.constant 0 : index
    %189 = vector.load %arg2[%c0_39, %c0_40] : memref<4x2xf32, #tpu.memory_space<vmem>>, vector<4x2xf32>
    tpu.vector_store %arg2[%c0_39, %c0_40], %188 {strides = array<i32>} : memref<4x2xf32, #tpu.memory_space<vmem>>, vector<4x2xf32>,
    return
  }
}

</mosaic_0001>

<bundles_post_ra>
// kernel: tile.9
= control target key start
LH: loop header
LB: loop body
LE: loop exit
PB: predicated region body
PF: predicated region fallthrough
CT: control target
= control target key end

     0   :  { %vm84_vm0 = vcmask 1047556   ;;  %s192_s15 = smov 64   ;;  %vm86_vm1 = vcmask 523264   ;;  %vm114_vm2 = vcmask 1048064   ;;  %s282_s0 = inlined_call_operand.vmem [shape: f32[4,2,64,5], index: 0, kind: input, shape index: {}]   ;;  %s283_s1 = inlined_call_operand.vmem [shape: f32[4,128,5], index: 1, kind: output, shape index: {}]  }
   0x1   :  { %v180_v0 = vld [vmem:[%s282_s0 + $0xe] sm:$0x3]  ;;  %v181_v1 = vld [vmem:[%s282_s0 + $0xc] sm:$0x3]  ;;  %v182_v2 = vld [vmem:[%s282_s0 + $0xa] sm:$0x3] }
   0x2   :  { %55 = vst [vmem:[#allocation1 + $0x38] sm:$0x3] %v180_v0  ;;  %v183_v3 = vld [vmem:[%s282_s0 + $0x8] sm:$0x3]  ;;  %v184_v4 = vld [vmem:[%s282_s0 + $0x6] sm:$0x3] }
   0x3   :  { %59 = vst [vmem:[#allocation1 + $0x30] sm:$0x3] %v181_v1  ;;  %v185_v5 = vld [vmem:[%s282_s0 + $0x4] sm:$0x3]  ;;  %v186_v6 = vld [vmem:[%s282_s0 + $0x2] sm:$0x3] }
   0x4   :  { %63 = vst [vmem:[#allocation1 + $0x28] sm:$0x3] %v182_v2  ;;  %v80_v7 = vld [vmem:[%s282_s0] sm:$0x3]  ;;  %v172_v8 = vld [vmem:[%s282_s0 + $0x1e] sm:$0x3] }
   0x5   :  { %67 = vst [vmem:[#allocation1 + $0x20] sm:$0x3] %v183_v3  ;;  %v173_v9 = vld [vmem:[%s282_s0 + $0x1c] sm:$0x3]  ;;  %v174_v10 = vld [vmem:[%s282_s0 + $0x1a] sm:$0x3] }
   0x6   :  { %71 = vst [vmem:[#allocation1 + $0x18] sm:$0x3] %v184_v4  ;;  %v175_v11 = vld [vmem:[%s282_s0 + $0x18] sm:$0x3]  ;;  %v168_v12 = vld [vmem:[%s282_s0 + $0x26] sm:$0x3] }
   0x7   :  { %75 = vst [vmem:[#allocation1 + $0x10] sm:$0x3] %v185_v5  ;;  %v169_v13 = vld [vmem:[%s282_s0 + $0x24] sm:$0x3]  ;;  %v170_v14 = vld [vmem:[%s282_s0 + $0x22] sm:$0x3] }
   0x8   :  { %79 = vst [vmem:[#allocation1 + $0x8] sm:$0x3] %v186_v6  ;;  %v171_v15 = vld [vmem:[%s282_s0 + $0x20] sm:$0x3]  ;;  %v176_v17 = vld [vmem:[%s282_s0 + $0x16] sm:$0x3] }
   0x9   :  { %81 = vst [vmem:[#allocation1] sm:$0x3] %v80_v7  ;;  %v177_v18 = vld [vmem:[%s282_s0 + $0x14] sm:$0x3]  ;;  %v178_v21 = vld [vmem:[%s282_s0 + $0x12] sm:$0x3] }
   0xa   :  { %23 = vst [vmem:[#allocation1 + $0x78] sm:$0x3] %v172_v8  ;;  %v179_v22 = vld [vmem:[%s282_s0 + $0x10] sm:$0x3] }
   0xb   :  { %27 = vst [vmem:[#allocation1 + $0x70] sm:$0x3] %v173_v9 }
   0xc   :  { %31 = vst [vmem:[#allocation1 + $0x68] sm:$0x3] %v174_v10  ;;  %v109_v16 = vld [vmem:[#allocation1 + $0x1] ss:$8 sm:$0xf0]  }
   0xd   :  { %35 = vst [vmem:[#allocation1 + $0x60] sm:$0x3] %v175_v11  ;;  %v83_v28 = vld [vmem:[#allocation1] ss:$8 sm:$0xf0]  }
   0xe   :  { %7 = vst [vmem:[#allocation1 + $0x98] sm:$0x3] %v168_v12 }
   0xf   :  { %11 = vst [vmem:[#allocation1 + $0x90] sm:$0x3] %v169_v13 }
  0x10   :  { %v107_v19 = vld [vmem:[#allocation1 + $0x1] ss:$8 sm:$0xf]   ;;  %15 = vst [vmem:[#allocation1 + $0x88] sm:$0x3] %v170_v14 }
  0x11   :  { %v111_v20 = vsel %vm84_vm0, %v109_v16, %v107_v19  ;;  %19 = vst [vmem:[#allocation1 + $0x80] sm:$0x3] %v171_v15  ;;  %v82_v27 = vld [vmem:[#allocation1] ss:$8 sm:$0xf]  }
  0x12   :  { %112 = vrot.lane.b32.xlu0 %v111_v20, %s192_s15  ;;  %39 = vst [vmem:[#allocation1 + $0x58] sm:$0x3] %v176_v17  ;;  %v85_v29 = vsel %vm84_vm0, %v83_v28, %v82_v27 }
  0x13   :  { %43 = vst [vmem:[#allocation1 + $0x50] sm:$0x3] %v177_v18 }
  0x14   :  { %v132_v23 = vld [vmem:[#allocation1 + $0x61] ss:$8 sm:$0xf]   ;;  %47 = vst [vmem:[#allocation1 + $0x48] sm:$0x3] %v178_v21 }
  0x15   :  { %133 = vrot.lane.b32.xlu1 %v132_v23, %s192_s15  ;;  %51 = vst [vmem:[#allocation1 + $0x40] sm:$0x3] %v179_v22  ;;  %v93_v31 = vld [vmem:[#allocation1 + $0x40] ss:$8 sm:$0xf0]  }
  0x16   :  { %87 = vst.msk [vmem:[#allocation0] sm:$0xf] %vm86_vm1, %v85_v29  }
  0x17   :  { %89 = vst.msk [vmem:[#allocation0 + $0x4] sm:$0xf0] %vm86_vm1, %v85_v29  }
  0x18   :  { %v119_v24 = vld [vmem:[#allocation1 + $0x81] ss:$8 sm:$0xf]   ;;  %v102_v33 = vld [vmem:[#allocation1 + $0x80] ss:$8 sm:$0xf]  }
  0x19   :  { %105 = vst.msk [vmem:[#allocation0 + $0x20] sm:$0xf] %vm86_vm1, %v102_v33  }
  0x1c   :  { %v121_v25 = vld [vmem:[#allocation1 + $0x21] ss:$8 sm:$0xf0]   ;;  %v91_v30 = vld [vmem:[#allocation1 + $0x40] ss:$8 sm:$0xf]  }
  0x1d   :  { %v123_v26 = vsel %vm84_vm0, %v121_v25, %v119_v24  ;;  %v95_v32 = vsel %vm84_vm0, %v93_v31, %v91_v30 }
  0x1e   :  { %124 = vrot.lane.b32.xlu0 %v123_v26, %s192_s15  ;;  %100 = vst.msk [vmem:[#allocation0 + $0x14] sm:$0xf0] %vm86_vm1, %v95_v32  }
  0x1f   :  { %98 = vst.msk [vmem:[#allocation0 + $0x10] sm:$0xf] %vm86_vm1, %v95_v32  }
  0x84   :  { %v113_v34 = vpop.permute.xlu0 %112  }
  0x85   :  { %115 = vst.msk [vmem:[#allocation0] sm:$0xf] %vm114_vm2, %v113_v34  }
  0x86   :  { %117 = vst.msk [vmem:[#allocation0 + $0x4] sm:$0xf0] %vm114_vm2, %v113_v34  }
  0x87   :  { %v134_v35 = vpop.permute.xlu1 %133  }
  0x88   :  { %137 = vst.msk [vmem:[#allocation0 + $0x18] sm:$0xf] %vm114_vm2, %v134_v35  }
  0x8c   :  { %v140_v36 = vld [vmem:[#allocation0] sm:$0xf] }
  0x8d   :  { %143 = vst [vmem:[%s283_s1] sm:$0xf] %v140_v36  ;;  %v145_v37 = vld [vmem:[#allocation0 + $0x8] sm:$0xf] }
  0x8e   :  { %187 = vst [vmem:[%s283_s1 + $0x4] sm:$0xf] %v145_v37 }
  0x8f   :  { %v157_v38 = vld [vmem:[#allocation0 + $0x18] sm:$0xf] }
  0x90   :  { %189 = vst [vmem:[%s283_s1 + $0xc] sm:$0xf] %v157_v38  ;;  %v125_v39 = vpop.permute.xlu0 %124  }
  0x91   :  { %128 = vst.msk [vmem:[#allocation0 + $0x20] sm:$0xf] %vm114_vm2, %v125_v39  }
  0x92   :  { %130 = vst.msk [vmem:[#allocation0 + $0xc] sm:$0xf0] %vm114_vm2, %v125_v39  }
  0x98   :  { %v163_v40 = vld [vmem:[#allocation0 + $0x20] sm:$0xf] }
  0x99   :  { %v151_v41 = vld [vmem:[#allocation0 + $0x10] sm:$0xf]  ;;  %190 = vst [vmem:[%s283_s1 + $0x10] sm:$0xf] %v163_v40 }
  0x9a   :  { %188 = vst [vmem:[%s283_s1 + $0x8] sm:$0xf] %v151_v41 }

// kernel: lmda_pallas.1
= control target key start
LH: loop header
LB: loop body
LE: loop exit
PB: predicated region body
PF: predicated region fallthrough
CT: control target
= control target key end

     0   :  { %v1319_v0 = vmov 1   ;;  %v1320_v2 = vmov 0   ;;  %s1321_s13 = smov 127   ;;  %s1322_s14 = smov 126   ;;  %v1323_v9 = vmov 5   ;;  %v1326_v11 = vmov 2   ;;  %s1809_s1 = inlined_call_operand.vmem [shape: f32[144,128], index: 1, kind: input, shape index: {}]   ;;  %s1810_s0 = inlined_call_operand.vmem [shape: f32[8,128], index: 0, kind: input, shape index: {}]   ;;  %s1811_s2 = inlined_call_operand.vmem [shape: f32[4,2], index: 2, kind: output, shape index: {}]  }
   0x1   :  { %1201 = vset.pattern.permute.xlu2 %v1319_v0  ;;  %1199 = vset.pattern.permute.xlu1 %v1319_v0  ;;  %v1359_v1 = vld [vmem:[%s1809_s1 + $0x8] sm:$0xff]  ;;  %v1374_v7 = vld [vmem:[%s1810_s0] sm:$0xff]  ;;  %s1324_s15 = smov 124   ;;  %s1325_s0 = smov 125   ;;  %v1327_v18 = vmov 3   ;;  %v1328_v19 = vmov 4  }
   0x2   :  { %1198 = vset.pattern.permute.xlu0 %v1320_v2  ;;  %v21_v3 = vrot.slane %v1359_v1, 7  ;;  %v20_v4 = vrot.slane %v1359_v1, 6  ;;  %v19_v8 = vrot.slane %v1359_v1, 5  ;;  %v18_v12 = vrot.slane %v1359_v1, 4  ;;  %s1329_s16 = smov 123   ;;  %s1330_s17 = smov 122  }
   0x3   :  { %v17_v13 = vrot.slane %v1359_v1, 3  ;;  %v15_v16 = vrot.slane %v1359_v1, 1  ;;  %v16_v20 = vrot.slane %v1359_v1, 2  ;;  %v1440_v22 = vperm.slane %v1359_v1, 0  ;;  %s1334_s18 = smov 121   ;;  %s1335_s19 = smov 120  }
   0x4   :  { %v1364_v5 = vperm.slane %v21_v3, 0  ;;  %v1366_v6 = vperm.slane %v20_v4, 0  ;;  %v1382_v10 = vperm.slane %v19_v8, 0  ;;  %v1393_v14 = vperm.slane %v18_v12, 0 }
   0x5   :  { %v1395_v15 = vperm.slane %v17_v13, 0  ;;  %v1403_v17 = vperm.slane %v15_v16, 0  ;;  %v1428_v21 = vperm.slane %v16_v20, 0  ;;  %v1331_v25 = vmov 8  }
   0x6   :  { %101 = vperm.xlu1 %1199, %v1364_v5   ;;  %59 = vperm.xlu0 %1198, %v1364_v5   ;;  %v1332_v26 = vmov 6   ;;  %v1333_v28 = vmov 7   ;;  %vm647_vm0 = vcmask 523264   ;;  %vm963_vm3 = vcmask 1044480  }
   0x7   :  { %97 = vperm.xlu2 %1201, %v1366_v6   ;;  %vm946_vm4 = vcmask 39936   ;;  %vm1084_vm13 = vcmask 11264  }
   0xe   :  { %1200 = vset.pattern.permute.xlu1 %v1320_v2  ;;  %70 = vrot.lane.b32.xlu0 %v1374_v7, %s1321_s13 }
   0xf   :  { %120 = vrot.lane.b32.xlu2 %v1374_v7, %s1322_s14  ;;  %55 = vperm.xlu1 %1200, %v1366_v6  }
  0x10   :  { %1211 = vset.pattern.permute.xlu0 %v1323_v9 }
  0x16   :  { %220 = vrot.lane.b32.xlu0 %v1374_v7, %s1324_s15 }
  0x17   :  { %93 = vperm.xlu2 %1201, %v1382_v10   ;;  %51 = vperm.xlu1 %1200, %v1382_v10  }
  0x1e   :  { %301 = vperm.xlu0 %1211, %v1364_v5  }
  0x1f   :  { %170 = vrot.lane.b32.xlu2 %v1374_v7, %s1325_s0  ;;  %1202 = vset.pattern.permute.xlu1 %v1326_v11 }
  0x20   :  { %147 = vperm.xlu1 %1202, %v1366_v6  }
  0x26   :  { %1212 = vset.pattern.permute.xlu0 %v1319_v0 }
  0x27   :  { %89 = vperm.xlu2 %1201, %v1393_v14   ;;  %85 = vperm.xlu0 %1212, %v1395_v15  }
  0x28   :  { %1203 = vset.pattern.permute.xlu1 %v1320_v2 }
  0x29   :  { %47 = vperm.xlu1 %1203, %v1393_v14  }
  0x2f   :  { %1205 = vset.pattern.permute.xlu2 %v1327_v18  ;;  %77 = vperm.xlu0 %1212, %v1403_v17  }
  0x30   :  { %197 = vperm.xlu2 %1205, %v1366_v6  }
  0x31   :  { %1204 = vset.pattern.permute.xlu1 %v1326_v11 }
  0x32   :  { %143 = vperm.xlu1 %1204, %v1382_v10  }
  0x37   :  { %1220 = vset.pattern.permute.xlu0 %v1326_v11 }
  0x38   :  { %1207 = vset.pattern.permute.xlu2 %v1320_v2  ;;  %151 = vperm.xlu0 %1220, %v1364_v5  }
  0x39   :  { %43 = vperm.xlu2 %1207, %v1395_v15  }
  0x3a   :  { %1206 = vset.pattern.permute.xlu1 %v1328_v19 }
  0x3b   :  { %251 = vperm.xlu1 %1206, %v1364_v5  }
  0x40   :  { %127 = vperm.xlu0 %1220, %v1403_v17  }
  0x41   :  { %1209 = vset.pattern.permute.xlu2 %v1327_v18 }
  0x42   :  { %193 = vperm.xlu2 %1209, %v1382_v10  }
  0x43   :  { %1208 = vset.pattern.permute.xlu1 %v1326_v11 }
  0x44   :  { %139 = vperm.xlu1 %1208, %v1393_v14  }
  0x48   :  { %1228 = vset.pattern.permute.xlu0 %v1328_v19 }
  0x49   :  { %243 = vperm.xlu0 %1228, %v1382_v10  }
  0x4a   :  { %270 = vrot.lane.b32.xlu2 %v1374_v7, %s1329_s16 }
  0x4b   :  { %1214 = vset.pattern.permute.xlu2 %v1319_v0 }
  0x4c   :  { %1210 = vset.pattern.permute.xlu1 %v1328_v19 }
  0x4d   :  { %247 = vperm.xlu1 %1210, %v1366_v6  }
  0x51   :  { %231 = vperm.xlu0 %1228, %v1428_v21  }
  0x52   :  { %81 = vperm.xlu2 %1214, %v1428_v21  }
  0x55   :  { %1213 = vset.pattern.permute.xlu1 %v1320_v2 }
  0x56   :  { %39 = vperm.xlu1 %1213, %v1428_v21  }
  0x59   :  { %1236 = vset.pattern.permute.xlu0 %v1327_v18 }
  0x5a   :  { %1216 = vset.pattern.permute.xlu2 %v1327_v18  ;;  %201 = vperm.xlu0 %1236, %v1364_v5  }
  0x5b   :  { %189 = vperm.xlu2 %1216, %v1393_v14  }
  0x5e   :  { %1215 = vset.pattern.permute.xlu1 %v1326_v11 }
  0x5f   :  { %135 = vperm.xlu1 %1215, %v1395_v15  }
  0x61   :  { %v98_v23 = vpop.permute.xlu2 %97 }
  0x62   :  { %173 = vperm.xlu0 %1236, %v1440_v22  }
  0x63   :  { %320 = vrot.lane.b32.xlu2 %v1374_v7, %s1330_s17 }
  0x64   :  { %1219 = vset.pattern.permute.xlu2 %v1320_v2 }
  0x67   :  { %1217 = vset.pattern.permute.xlu1 %v1323_v9 }
  0x68   :  { %297 = vperm.xlu1 %1217, %v1366_v6  }
  0x69   :  { %v1448_v24 = vpop.permute.xlu2 %120 }
  0x6a   :  { %1245 = vset.pattern.permute.xlu0 %v1331_v25 }
  0x6b   :  { %35 = vperm.xlu2 %1219, %v1403_v17   ;;  %443 = vperm.xlu0 %1245, %v1382_v10  }
  0x70   :  { %1218 = vset.pattern.permute.xlu1 %v1332_v26 }
  0x71   :  { %351 = vperm.xlu1 %1218, %v1364_v5   ;;  %v94_v27 = vpop.permute.xlu2 %93 }
  0x73   :  { %1222 = vset.pattern.permute.xlu2 %v1327_v18  ;;  %1246 = vset.pattern.permute.xlu0 %v1333_v28 }
  0x74   :  { %185 = vperm.xlu2 %1222, %v1395_v15   ;;  %397 = vperm.xlu0 %1246, %v1366_v6  }
  0x78   :  { %v102_v29 = vpop.permute.xlu1 %101  ;;  %v60_v30 = vpop.permute.xlu0 %59 }
  0x79   :  { %1221 = vset.pattern.permute.xlu1 %v1326_v11  ;;  %v1460_v31 = vpop.permute.xlu2 %170  ;;  %v69_v32 = vmul.f32 %v60_v30, %v1374_v7 }
  0x7a   :  { %131 = vperm.xlu1 %1221, %v1428_v21  }
  0x7c   :  { %1224 = vset.pattern.permute.xlu2 %v1323_v9  ;;  %385 = vperm.xlu0 %1246, %v1395_v15  }
  0x7d   :  { %293 = vperm.xlu2 %1224, %v1382_v10  }
  0x80   :  { %v1467_v33 = vpop.permute.xlu0 %70 }
  0x81   :  { %v56_v34 = vpop.permute.xlu1 %55  ;;  %v110_v35 = vmul.f32 %v98_v23, %v1467_v33  ;;  %v90_v36 = vpop.permute.xlu2 %89  ;;  %v111_v37 = vmul.f32 %v102_v29, %v1467_v33  ;;  %v109_v44 = vmul.f32 %v94_v27, %v1467_v33 }
  0x82   :  { %v68_v38 = vmul.f32 %v56_v34, %v1374_v7  ;;  %1223 = vset.pattern.permute.xlu1 %v1328_v19  ;;  %v108_v58 = vmul.f32 %v90_v36, %v1467_v33 }
  0x83   :  { %239 = vperm.xlu1 %1223, %v1393_v14   ;;  %v1474_v39 = vadd.f32 %v111_v37, %v69_v32 }
  0x84   :  { %v118_v40 = vadd.f32 %v110_v35, %v68_v38  ;;  %1251 = vset.pattern.permute.xlu0 %v1332_v26  ;;  %v471_v38 = vlaneseq }
  0x85   :  { %1225 = vset.pattern.permute.xlu2 %v1333_v28  ;;  %347 = vperm.xlu0 %1251, %v1366_v6  }
  0x86   :  { %401 = vperm.xlu2 %1225, %v1364_v5  }
  0x88   :  { %v1480_v41 = vpop.permute.xlu0 %220 }
  0x89   :  { %v52_v42 = vpop.permute.xlu1 %51 }
  0x8a   :  { %v67_v43 = vmul.f32 %v52_v42, %v1374_v7  ;;  %v198_v45 = vpop.permute.xlu2 %197 }
  0x8b   :  { %370 = vrot.lane.b32.xlu1 %v1374_v7, %s1334_s18  ;;  %v210_v49 = vmul.f32 %v198_v45, %v1460_v31 }
  0x8c   :  { %v117_v46 = vadd.f32 %v109_v44, %v67_v43  ;;  %1226 = vset.pattern.permute.xlu1 %v1320_v2  ;;  %v1533_v43 = vshrl.u32 %v471_v38, 7 }
  0x8d   :  { %327 = vperm.xlu0 %1251, %v1403_v17  }
  0x8e   :  { %1227 = vset.pattern.permute.xlu2 %v1319_v0 }
  0x8f   :  { %73 = vperm.xlu2 %1227, %v1440_v22  }
  0x90   :  { %v1489_v47 = vpop.permute.xlu0 %301 }
  0x92   :  { %v148_v48 = vpop.permute.xlu1 %147 }
  0x93   :  { %v160_v50 = vmul.f32 %v148_v48, %v1448_v24  ;;  %31 = vperm.xlu1 %1226, %v1440_v22   ;;  %v44_v51 = vpop.permute.xlu2 %43 }
  0x94   :  { %v65_v54 = vmul.f32 %v44_v51, %v1374_v7 }
  0x95   :  { %v168_v52 = vadd.f32 %v160_v50, %v118_v40  ;;  %323 = vperm.xlu0 %1251, %v1440_v22  }
  0x97   :  { %1230 = vset.pattern.permute.xlu2 %v1328_v19  ;;  %v218_v53 = vadd.f32 %v210_v49, %v168_v52 }
  0x98   :  { %235 = vperm.xlu2 %1230, %v1395_v15  }
  0x99   :  { %v86_v55 = vpop.permute.xlu0 %85 }
  0x9a   :  { %v107_v56 = vmul.f32 %v86_v55, %v1467_v33 }
  0x9b   :  { %v48_v57 = vpop.permute.xlu1 %47  ;;  %1229 = vset.pattern.permute.xlu1 %v1327_v18 }
  0x9c   :  { %v1501_v59 = vadd.f32 %v107_v56, %v65_v54  ;;  %v66_v60 = vmul.f32 %v48_v57, %v1374_v7  ;;  %v194_v61 = vpop.permute.xlu2 %193  ;;  %181 = vperm.xlu1 %1229, %v1428_v21  }
  0x9d   :  { %v209_v4 = vmul.f32 %v194_v61, %v1460_v31  ;;  %1262 = vset.pattern.permute.xlu0 %v1533_v43 }
  0x9e   :  { %v116_v62 = vadd.f32 %v108_v58, %v66_v60 }
  0xa0   :  { %1232 = vset.pattern.permute.xlu2 %v1332_v26 }
  0xa1   :  { %343 = vperm.xlu2 %1232, %v1382_v10   ;;  %v78_v63 = vpop.permute.xlu0 %77 }
  0xa4   :  { %v144_v0 = vpop.permute.xlu1 %143  ;;  %1231 = vset.pattern.permute.xlu1 %v1323_v9  ;;  %v1508_v1 = vpop.permute.xlu2 %270 }
  0xa5   :  { %v159_v3 = vmul.f32 %v144_v0, %v1448_v24  ;;  %289 = vperm.xlu1 %1231, %v1393_v14  }
  0xa7   :  { %v167_v8 = vadd.f32 %v159_v3, %v117_v46  ;;  %v105_v46 = vmul.f32 %v78_v63, %v1467_v33 }
  0xa9   :  { %1233 = vset.pattern.permute.xlu2 %v1331_v25  ;;  %v217_v12 = vadd.f32 %v209_v4, %v167_v8  ;;  %v311_v8 = vmul.f32 %v1489_v47, %v1508_v1 }
  0xaa   :  { %451 = vperm.xlu2 %1233, %v1364_v5   ;;  %v152_v13 = vpop.permute.xlu0 %151 }
  0xab   :  { %v161_v54 = vmul.f32 %v152_v13, %v1448_v24 }
  0xac   :  { %v82_v16 = vpop.permute.xlu2 %81 }
  0xad   :  { %v252_v20 = vpop.permute.xlu1 %251  ;;  %420 = vrot.lane.b32.xlu1 %v1374_v7, %s1335_s19  ;;  %v106_v50 = vmul.f32 %v82_v16, %v1467_v33  ;;  %v169_v60 = vadd.f32 %v161_v54, %v1474_v39 }
  0xae   :  { %1234 = vset.pattern.permute.xlu1 %v1326_v11  ;;  %v261_v63 = vmul.f32 %v252_v20, %v1480_v41  ;;  %v1566_v20 = vld [vmem:[%s1809_s1] sm:$0xff] }
  0xaf   :  { %v498_v47 = vperm.slane %v1566_v20, 4 }
  0xb1   :  { %503 = vperm.xlu0 %1262, %v498_v47  }
  0xb2   :  { %1235 = vset.pattern.permute.xlu2 %v1327_v18  ;;  %v128_v23 = vpop.permute.xlu0 %127 }
  0xb3   :  { %177 = vperm.xlu2 %1235, %v1403_v17   ;;  %v155_v51 = vmul.f32 %v128_v23, %v1448_v24 }
  0xb5   :  { %v190_v27 = vpop.permute.xlu2 %189  ;;  %123 = vperm.xlu1 %1234, %v1440_v22  }
  0xb6   :  { %v140_v29 = vpop.permute.xlu1 %139  ;;  %v208_v32 = vmul.f32 %v190_v27, %v1460_v31 }
  0xb7   :  { %v158_v30 = vmul.f32 %v140_v29, %v1448_v24 }
  0xb9   :  { %v166_v34 = vadd.f32 %v158_v30, %v116_v62 }
  0xbb   :  { %1238 = vset.pattern.permute.xlu2 %v1332_v26  ;;  %v244_v35 = vpop.permute.xlu0 %243  ;;  %v1523_v36 = vadd.f32 %v208_v32, %v166_v34 }
  0xbc   :  { %339 = vperm.xlu2 %1238, %v1393_v14   ;;  %v259_v11 = vmul.f32 %v244_v35, %v1480_v41 }
  0xbd   :  { %v1527_v18 = vpop.permute.xlu2 %320  ;;  %1237 = vset.pattern.permute.xlu1 %v1323_v9 }
  0xbe   :  { %v267_v37 = vadd.f32 %v259_v11, %v217_v12  ;;  %285 = vperm.xlu1 %1237, %v1395_v15   ;;  %v1336_v11 = vmov 9  }
  0xbf   :  { %v248_v40 = vpop.permute.xlu1 %247  ;;  %1267 = vset.pattern.permute.xlu0 %v1336_v11 }
  0xc0   :  { %v260_v42 = vmul.f32 %v248_v40, %v1480_v41  ;;  %551 = vperm.xlu0 %1267, %v1393_v14  }
  0xc2   :  { %v268_v44 = vadd.f32 %v260_v42, %v218_v53  ;;  %v519_v42 = vperm.slane %v1566_v20, 7 }
  0xc3   :  { %v1536_v45 = vpop.permute.xlu0 %231 }
  0xc4   :  { %1240 = vset.pattern.permute.xlu2 %v1331_v25 }
  0xc5   :  { %447 = vperm.xlu2 %1240, %v1366_v6   ;;  %v36_v48 = vpop.permute.xlu2 %35 }
  0xc6   :  { %v63_v49 = vmul.f32 %v36_v48, %v1374_v7  ;;  %1239 = vset.pattern.permute.xlu1 %v1333_v28 }
  0xc7   :  { %393 = vperm.xlu1 %1239, %v1382_v10  }
  0xc8   :  { %v113_v52 = vadd.f32 %v105_v46, %v63_v49  ;;  %v40_v53 = vpop.permute.xlu1 %39  ;;  %543 = vperm.xlu0 %1267, %v1428_v21  }
  0xc9   :  { %v64_v55 = vmul.f32 %v40_v53, %v1374_v7  ;;  %v512_v53 = vperm.slane %v1566_v20, 6 }
  0xca   :  { %v1548_v56 = vadd.f32 %v155_v51, %v113_v52 }
  0xcb   :  { %v114_v57 = vadd.f32 %v106_v50, %v64_v55 }
  0xcc   :  { %v202_v58 = vpop.permute.xlu0 %201 }
  0xcd   :  { %1242 = vset.pattern.permute.xlu2 %v1323_v9  ;;  %v211_v61 = vmul.f32 %v202_v58, %v1460_v31 }
  0xce   :  { %281 = vperm.xlu2 %1242, %v1428_v21   ;;  %v186_v62 = vpop.permute.xlu2 %185 }
  0xcf   :  { %v219_v0 = vadd.f32 %v211_v61, %v169_v60  ;;  %1241 = vset.pattern.permute.xlu1 %v1328_v19  ;;  %v207_v13 = vmul.f32 %v186_v62, %v1460_v31 }
  0xd0   :  { %227 = vperm.xlu1 %1241, %v1403_v17   ;;  %535 = vperm.xlu0 %1267, %v1440_v22  }
  0xd1   :  { %v269_v3 = vadd.f32 %v261_v63, %v219_v0  ;;  %v136_v4 = vpop.permute.xlu1 %135 }
  0xd2   :  { %v157_v39 = vmul.f32 %v136_v4, %v1448_v24 }
  0xd3   :  { %v319_v12 = vadd.f32 %v311_v8, %v269_v3 }
  0xd4   :  { %v165_v16 = vadd.f32 %v157_v39, %v1501_v59 }
  0xd6   :  { %1244 = vset.pattern.permute.xlu2 %v1333_v28  ;;  %v215_v23 = vadd.f32 %v207_v13, %v165_v16 }
  0xd7   :  { %389 = vperm.xlu2 %1244, %v1393_v14   ;;  %v294_v27 = vpop.permute.xlu2 %293 }
  0xd8   :  { %v309_v29 = vmul.f32 %v294_v27, %v1508_v1  ;;  %1243 = vset.pattern.permute.xlu1 %v1332_v26  ;;  %1273 = vset.pattern.permute.xlu0 %v1323_v9 }
  0xd9   :  { %335 = vperm.xlu1 %1243, %v1395_v15  }
  0xda   :  { %v317_v59 = vadd.f32 %v309_v29, %v267_v37  ;;  %v298_v30 = vpop.permute.xlu1 %297  ;;  %v505_v29 = vperm.slane %v1566_v20, 5 }
  0xdb   :  { %v310_v32 = vmul.f32 %v298_v30, %v1508_v1 }
  0xdd   :  { %v1574_v34 = vadd.f32 %v310_v32, %v268_v44 }
  0xdf   :  { %1248 = vset.pattern.permute.xlu2 %v1328_v19 }
  0xe0   :  { %223 = vperm.xlu2 %1248, %v1440_v22   ;;  %v402_v35 = vpop.permute.xlu2 %401 }
  0xe1   :  { %1247 = vset.pattern.permute.xlu1 %v1533_v43 }
  0xe3   :  { %v352_v40 = vpop.permute.xlu1 %351 }
  0xe4   :  { %v361_v37 = vmul.f32 %v352_v40, %v1527_v18  ;;  %v174_v40 = vpop.permute.xlu0 %173 }
  0xe6   :  { %v369_v46 = vadd.f32 %v361_v37, %v319_v12 }
  0xe8   :  { %1250 = vset.pattern.permute.xlu2 %v1332_v26 }
  0xe9   :  { %331 = vperm.xlu2 %1250, %v1428_v21   ;;  %524 = vperm.xlu1 %1247, %v519_v42   ;;  %v74_v19 = vpop.permute.xlu2 %73 }
  0xec   :  { %v132_v44 = vpop.permute.xlu1 %131 }
  0xed   :  { %v156_v48 = vmul.f32 %v132_v44, %v1448_v24 }
  0xef   :  { %v164_v49 = vadd.f32 %v156_v48, %v114_v57 }
  0xf1   :  { %1253 = vset.pattern.permute.xlu2 %v1533_v43  ;;  %1249 = vset.pattern.permute.xlu1 %v1323_v9 }
  0xf2   :  { %v236_v50 = vpop.permute.xlu2 %235  ;;  %277 = vperm.xlu1 %1249, %v1403_v17  }
  0xf3   :  { %v257_v26 = vmul.f32 %v236_v50, %v1480_v41 }
  0xf5   :  { %v1592_v51 = vadd.f32 %v257_v26, %v215_v23  ;;  %v240_v52 = vpop.permute.xlu1 %239 }
  0xf6   :  { %v258_v54 = vmul.f32 %v240_v52, %v1480_v41  ;;  %v491_v52 = vperm.slane %v1566_v20, 3 }
  0xf8   :  { %v266_v55 = vadd.f32 %v258_v54, %v1523_v36  ;;  %v104_v36 = vmul.f32 %v74_v19, %v1467_v33  ;;  %v204_v19 = vmul.f32 %v174_v40, %v1460_v31  ;;  %v444_v54 = vpop.permute.xlu0 %443 }
  0xf9   :  { %517 = vperm.xlu2 %1253, %v512_v53  }
  0xfa   :  { %1252 = vset.pattern.permute.xlu1 %v1331_v25 }
  0xfb   :  { %v344_v57 = vpop.permute.xlu2 %343  ;;  %439 = vperm.xlu1 %1252, %v1393_v14  }
  0xfc   :  { %v359_v58 = vmul.f32 %v344_v57, %v1527_v18 }
  0xfd   :  { %v1601_v60 = vpop.permute.xlu1 %370 }
  0xfe   :  { %v1603_v61 = vadd.f32 %v359_v58, %v317_v59  ;;  %v411_v62 = vmul.f32 %v402_v35, %v1601_v60  ;;  %v484_v58 = vperm.slane %v1566_v20, 2 }
 0x100   :  { %v419_v63 = vadd.f32 %v411_v62, %v369_v46 }
 0x101   :  { %1255 = vset.pattern.permute.xlu2 %v1323_v9 }
 0x102   :  { %273 = vperm.xlu2 %1255, %v1440_v22  }
 0x103   :  { %1254 = vset.pattern.permute.xlu1 %v1336_v11 }
 0x104   :  { %563 = vperm.xlu1 %1254, %v1364_v5   ;;  %v452_v14 = vpop.permute.xlu2 %451  ;;  %v256_v5 = vmul.f32 %v1536_v45, %v1480_v41 }
 0x105   :  { %v32_v0 = vpop.permute.xlu1 %31 }
 0x106   :  { %v62_v3 = vmul.f32 %v32_v0, %v1374_v7  ;;  %v477_v0 = vperm.slane %v1566_v20, 1 }
 0x108   :  { %v112_v4 = vadd.f32 %v104_v36, %v62_v3  ;;  %v398_v3 = vpop.permute.xlu0 %397 }
 0x10a   :  { %1257 = vset.pattern.permute.xlu2 %v1331_v25 }
 0x10b   :  { %435 = vperm.xlu2 %1257, %v1395_v15  }
 0x10c   :  { %1256 = vset.pattern.permute.xlu1 %v1333_v28 }
 0x10d   :  { %v178_v8 = vpop.permute.xlu2 %177  ;;  %381 = vperm.xlu1 %1256, %v1428_v21  }
 0x10e   :  { %v205_v39 = vmul.f32 %v178_v8, %v1460_v31  ;;  %v182_v12 = vpop.permute.xlu1 %181 }
 0x10f   :  { %v206_v33 = vmul.f32 %v182_v12, %v1460_v31 }
 0x110   :  { %v1621_v7 = vadd.f32 %v205_v39, %v1548_v56 }
 0x111   :  { %v214_v13 = vadd.f32 %v206_v33, %v164_v49  ;;  %v386_v33 = vpop.permute.xlu0 %385 }
 0x113   :  { %1259 = vset.pattern.permute.xlu2 %v1336_v11  ;;  %v264_v16 = vadd.f32 %v256_v5, %v214_v13 }
 0x114   :  { %559 = vperm.xlu2 %1259, %v1366_v6  }
 0x115   :  { %1258 = vset.pattern.permute.xlu1 %v1533_v43 }
 0x116   :  { %v340_v23 = vpop.permute.xlu2 %339 }
 0x117   :  { %v290_v27 = vpop.permute.xlu1 %289  ;;  %v358_v45 = vmul.f32 %v340_v23, %v1527_v18  ;;  %v470_v23 = vperm.slane %v1566_v20, 0 }
 0x118   :  { %v308_v47 = vmul.f32 %v290_v27, %v1508_v1 }
 0x11a   :  { %v316_v59 = vadd.f32 %v308_v47, %v266_v55 }
 0x11c   :  { %1261 = vset.pattern.permute.xlu2 %v1331_v25  ;;  %v366_v56 = vadd.f32 %v358_v45, %v316_v59 }
 0x11d   :  { %431 = vperm.xlu2 %1261, %v1428_v21   ;;  %510 = vperm.xlu1 %1258, %v505_v29  }
 0x11f   :  { %v1631_v30 = vpop.permute.xlu1 %420  ;;  %v1633_v6 = vpop.permute.xlu2 %447 }
 0x120   :  { %v461_v32 = vmul.f32 %v452_v14, %v1631_v30 }
 0x122   :  { %v1636_v35 = vadd.f32 %v461_v32, %v419_v63  ;;  %v460_v32 = vmul.f32 %v1633_v6, %v1631_v30 }
 0x125   :  { %1264 = vset.pattern.permute.xlu2 %v1333_v28  ;;  %1260 = vset.pattern.permute.xlu1 %v1333_v28 }
 0x126   :  { %373 = vperm.xlu2 %1264, %v1440_v22   ;;  %377 = vperm.xlu1 %1260, %v1403_v17  }
 0x127   :  { %v124_v37 = vpop.permute.xlu1 %123 }
 0x128   :  { %v154_v21 = vmul.f32 %v124_v37, %v1448_v24  ;;  %v282_v42 = vpop.permute.xlu2 %281 }
 0x129   :  { %v306_v46 = vmul.f32 %v282_v42, %v1508_v1 }
 0x12a   :  { %v162_v44 = vadd.f32 %v154_v21, %v112_v4 }
 0x12b   :  { %v314_v48 = vadd.f32 %v306_v46, %v264_v16 }
 0x12c   :  { %v212_v49 = vadd.f32 %v204_v19, %v162_v44 }
 0x12e   :  { %1266 = vset.pattern.permute.xlu2 %v1533_v43  ;;  %1263 = vset.pattern.permute.xlu1 %v1336_v11 }
 0x12f   :  { %555 = vperm.xlu1 %1263, %v1382_v10  }
 0x130   :  { %v286_v28 = vpop.permute.xlu1 %285 }
 0x131   :  { %v307_v50 = vmul.f32 %v286_v28, %v1508_v1  ;;  %v390_v26 = vpop.permute.xlu2 %389 }
 0x132   :  { %v408_v24 = vmul.f32 %v390_v26, %v1601_v60 }
 0x133   :  { %v315_v53 = vadd.f32 %v307_v50, %v1592_v51  ;;  %v459_v51 = vmul.f32 %v444_v54, %v1631_v30 }
 0x134   :  { %v1652_v31 = vadd.f32 %v408_v24, %v366_v56 }
 0x136   :  { %496 = vperm.xlu2 %1266, %v491_v52  }
 0x137   :  { %1265 = vset.pattern.permute.xlu1 %v1331_v25 }
 0x138   :  { %427 = vperm.xlu1 %1265, %v1403_v17  }
 0x139   :  { %v394_v55 = vpop.permute.xlu1 %393 }
 0x13a   :  { %v409_v10 = vmul.f32 %v394_v55, %v1601_v60  ;;  %v224_v57 = vpop.permute.xlu2 %223 }
 0x13b   :  { %v254_v62 = vmul.f32 %v224_v57, %v1480_v41 }
 0x13c   :  { %v417_v63 = vadd.f32 %v409_v10, %v1603_v61 }
 0x13d   :  { %v262_v36 = vadd.f32 %v254_v62, %v212_v49 }
 0x13e   :  { %489 = vperm.xlu2 %1266, %v484_v58   ;;  %v1661_v14 = vadd.f32 %v459_v51, %v417_v63 }
 0x140   :  { %423 = vperm.xlu1 %1265, %v1440_v22  }
 0x142   :  { %v228_v25 = vpop.permute.xlu1 %227 }
 0x143   :  { %v255_v4 = vmul.f32 %v228_v25, %v1480_v41  ;;  %v332_v8 = vpop.permute.xlu2 %331  ;;  %v407_v41 = vmul.f32 %v386_v33, %v1601_v60 }
 0x144   :  { %v356_v39 = vmul.f32 %v332_v8, %v1527_v18 }
 0x145   :  { %v263_v12 = vadd.f32 %v255_v4, %v1621_v7 }
 0x146   :  { %v1668_v61 = vadd.f32 %v356_v39, %v314_v48  ;;  %482 = vperm.xlu2 %1266, %v477_v0  }
 0x148   :  { %1268 = vset.pattern.permute.xlu1 %v1336_v11 }
 0x149   :  { %547 = vperm.xlu1 %1268, %v1395_v15  }
 0x14b   :  { %v336_v5 = vpop.permute.xlu1 %335 }
 0x14c   :  { %v357_v22 = vmul.f32 %v336_v5, %v1527_v18 }
 0x14e   :  { %v365_v13 = vadd.f32 %v357_v22, %v315_v53  ;;  %1270 = vset.pattern.permute.xlu2 %v1336_v11  ;;  %v348_v11 = vpop.permute.xlu0 %347 }
 0x14f   :  { %539 = vperm.xlu2 %1270, %v1403_v17   ;;  %v360_v45 = vmul.f32 %v348_v11, %v1527_v18  ;;  %v410_v17 = vmul.f32 %v398_v3, %v1601_v60 }
 0x150   :  { %v415_v16 = vadd.f32 %v407_v41, %v365_v13 }
 0x151   :  { %1269 = vset.pattern.permute.xlu1 %v1533_v43 }
 0x153   :  { %v518_v7 = vpop.permute.xlu2 %517 }
 0x156   :  { %v328_v28 = vpop.permute.xlu0 %327 }
 0x157   :  { %1272 = vset.pattern.permute.xlu2 %v1320_v2  ;;  %v368_v2 = vadd.f32 %v360_v45, %v1574_v34 }
 0x159   :  { %475 = vperm.xlu1 %1269, %v470_v23   ;;  %v418_v21 = vadd.f32 %v410_v17, %v368_v2 }
 0x15b   :  { %v525_v15 = vpop.permute.xlu1 %524  ;;  %v468_v42 = vadd.f32 %v460_v32, %v418_v21 }
 0x15c   :  { %v274_v27 = vpop.permute.xlu2 %273  ;;  %v533_v50 = vmul.f32 %v525_v15, %v1636_v35 }
 0x15d   :  { %v304_v47 = vmul.f32 %v274_v27, %v1508_v1  ;;  %v532_v46 = vmul.f32 %v518_v7, %v468_v42  ;;  %v355_v42 = vmul.f32 %v328_v28, %v1527_v18 }
 0x15e   :  { %v1694_v10 = vpop.permute.xlu0 %323 }
 0x15f   :  { %v1680_v29 = vadd.f32 %v304_v47, %v262_v36 }
 0x164   :  { %v278_v59 = vpop.permute.xlu1 %277 }
 0x165   :  { %v305_v43 = vmul.f32 %v278_v59, %v1508_v1  ;;  %v436_v56 = vpop.permute.xlu2 %435 }
 0x166   :  { %v457_v20 = vmul.f32 %v436_v56, %v1631_v30  ;;  %v504_v51 = vpop.permute.xlu0 %503 }
 0x167   :  { %v1689_v40 = vadd.f32 %v305_v43, %v263_v12 }
 0x168   :  { %v1691_v37 = vadd.f32 %v457_v20, %v415_v16 }
 0x16d   :  { %v440_v19 = vpop.permute.xlu1 %439 }
 0x16e   :  { %v560_v44 = vpop.permute.xlu2 %559  ;;  %v458_v35 = vmul.f32 %v440_v19, %v1631_v30  ;;  %v552_v41 = vpop.permute.xlu0 %551 }
 0x16f   :  { %v572_v48 = vadd.f32 %v560_v44, %v532_v46 }
 0x170   :  { %v466_v39 = vadd.f32 %v458_v35, %v1652_v31 }
 0x171   :  { %v588_v49 = vmul.f32 0.044715, %v572_v48  ;;  %v580_v5 = vmul.f32 0.5, %v572_v48 }
 0x172   :  { %v530_v13 = vmul.f32 %v504_v51, %v466_v39 }
 0x173   :  { %v596_v1 = vmul.f32 %v588_v49, %v572_v48 }
 0x174   :  { %v570_v7 = vadd.f32 %v552_v41, %v530_v13 }
 0x175   :  { %v604_v26 = vmul.f32 %v596_v1, %v572_v48 }
 0x176   :  { %v564_v34 = vpop.permute.xlu1 %563  ;;  %v586_v15 = vmul.f32 0.044715, %v570_v7 }
 0x177   :  { %v573_v24 = vadd.f32 %v564_v34, %v533_v50  ;;  %v612_v6 = vadd.f32 %v604_v26, %v572_v48  ;;  %v432_v58 = vpop.permute.xlu2 %431 }
 0x178   :  { %v594_v47 = vmul.f32 %v586_v15, %v570_v7  ;;  %v456_v32 = vmul.f32 %v432_v58, %v1631_v30 }
 0x179   :  { %v589_v52 = vmul.f32 0.044715, %v573_v24  ;;  %v620_v55 = vmul.f32 0.7978846, %v612_v6  ;;  %v581_v3 = vmul.f32 0.5, %v573_v24 }
 0x17a   :  { %v602_v45 = vmul.f32 %v594_v47, %v570_v7 }
 0x17b   :  { %v597_v53 = vmul.f32 %v589_v52, %v573_v24  ;;  %1277 = vtanh.f32 %v620_v55 }
 0x17c   :  { %v610_v2 = vadd.f32 %v602_v45, %v570_v7  ;;  %v354_v45 = vmul.f32 %v1694_v10, %v1527_v18 }
 0x17d   :  { %v605_v54 = vmul.f32 %v597_v53, %v573_v24 }
 0x17e   :  { %v618_v48 = vmul.f32 0.7978846, %v610_v2 }
 0x17f   :  { %v613_v57 = vadd.f32 %v605_v54, %v573_v24  ;;  %v382_v36 = vpop.permute.xlu1 %381 }
 0x180   :  { %v1697_v0 = vpop.permute.xlu2 %373  ;;  %v406_v31 = vmul.f32 %v382_v36, %v1601_v60 }
 0x181   :  { %v621_v62 = vmul.f32 0.7978846, %v613_v57  ;;  %v1278_v63 = vpop.eup %1277 }
 0x182   :  { %v636_v8 = vadd.f32 1.0, %v1278_v63  ;;  %v414_v43 = vadd.f32 %v406_v31, %v1668_v61  ;;  %v544_v61 = vpop.permute.xlu0 %543 }
 0x183   :  { %1279 = vtanh.f32 %v621_v62 }
 0x184   :  { %v1703_v22 = vmul.f32 %v636_v8, %v580_v5  ;;  %v464_v19 = vadd.f32 %v456_v32, %v414_v43  ;;  %1281 = vtanh.f32 %v618_v48 }
 0x189   :  { %v1280_v25 = vpop.eup %1279 }
 0x18a   :  { %v637_v4 = vadd.f32 1.0, %v1280_v25  ;;  %v1282_v55 = vpop.eup %1281 }
 0x18b   :  { %v634_v36 = vadd.f32 1.0, %v1282_v55 }
 0x18c   :  { %v1700_v12 = vmul.f32 %v637_v4, %v581_v3  ;;  %v578_v3 = vmul.f32 0.5, %v570_v7 }
 0x18e   :  { %659 = vmatpush.msra.mxu0 %v1700_v12  ;;  %v1717_v8 = vmul.f32 %v634_v36, %v578_v3 }
 0x18f   :  { %v511_v33 = vpop.permute.xlu1 %510 }
 0x190   :  { %660 = vmatpush.msra.mxu0 %v1703_v22  ;;  %v497_v16 = vpop.permute.xlu2 %496  ;;  %v531_v11 = vmul.f32 %v511_v33, %v1661_v14  ;;  %v363_v14 = vadd.f32 %v355_v42, %v1689_v40 }
 0x191   :  { %v529_v39 = vmul.f32 %v497_v16, %v1691_v37  ;;  %v362_v16 = vadd.f32 %v354_v45, %v1680_v29 }
 0x198   :  { %v378_v23 = vpop.permute.xlu1 %377  ;;  %v490_v27 = vpop.permute.xlu2 %489 }
 0x199   :  { %v405_v46 = vmul.f32 %v378_v23, %v1601_v60  ;;  %v528_v49 = vmul.f32 %v490_v27, %v464_v19 }
 0x19b   :  { %v413_v26 = vadd.f32 %v405_v46, %v363_v14  ;;  %v568_v6 = vadd.f32 %v544_v61, %v528_v49  ;;  %v536_v46 = vpop.permute.xlu0 %535 }
 0x19d   :  { %v584_v58 = vmul.f32 0.044715, %v568_v6 }
 0x19f   :  { %v592_v35 = vmul.f32 %v584_v58, %v568_v6 }
 0x1a0   :  { %v483_v56 = vpop.permute.xlu2 %482 }
 0x1a1   :  { %v556_v59 = vpop.permute.xlu1 %555  ;;  %v600_v5 = vmul.f32 %v592_v35, %v568_v6 }
 0x1a2   :  { %v571_v17 = vadd.f32 %v556_v59, %v531_v11  ;;  %v404_v59 = vmul.f32 %v1697_v0, %v1601_v60 }
 0x1a3   :  { %v608_v15 = vadd.f32 %v600_v5, %v568_v6 }
 0x1a4   :  { %v587_v20 = vmul.f32 0.044715, %v571_v17  ;;  %v579_v63 = vmul.f32 0.5, %v571_v17 }
 0x1a5   :  { %v616_v11 = vmul.f32 0.7978846, %v608_v15 }
 0x1a6   :  { %v595_v21 = vmul.f32 %v587_v20, %v571_v17 }
 0x1a8   :  { %v603_v44 = vmul.f32 %v595_v21, %v571_v17 }
 0x1a9   :  { %v540_v53 = vpop.permute.xlu2 %539 }
 0x1aa   :  { %v428_v1 = vpop.permute.xlu1 %427  ;;  %v611_v50 = vadd.f32 %v603_v44, %v571_v17 }
 0x1ab   :  { %v455_v34 = vmul.f32 %v428_v1, %v1631_v30 }
 0x1ac   :  { %v619_v24 = vmul.f32 0.7978846, %v611_v50 }
 0x1ad   :  { %v463_v52 = vadd.f32 %v455_v34, %v413_v26 }
 0x1ae   :  { %1283 = vtanh.f32 %v619_v24 }
 0x1af   :  { %v527_v28 = vmul.f32 %v483_v56, %v463_v52  ;;  %1285 = vtanh.f32 %v616_v11  ;;  %v412_v56 = vadd.f32 %v404_v59, %v362_v16 }
 0x1b1   :  { %v567_v54 = vadd.f32 %v540_v53, %v527_v28  ;;  %v646_v28 = vld [vmem:[%s1809_s1 + $0x10] sm:$0xff] }
 0x1b2   :  { %v424_v57 = vpop.permute.xlu1 %423 }
 0x1b3   :  { %v583_v62 = vmul.f32 0.044715, %v567_v54  ;;  %v454_v17 = vmul.f32 %v424_v57, %v1631_v30  ;;  %v576_v30 = vmul.f32 0.5, %v568_v6  ;;  %v575_v1 = vmul.f32 0.5, %v567_v54 }
 0x1b4   :  { %v1284_v40 = vpop.eup %1283 }
 0x1b5   :  { %v635_v51 = vadd.f32 1.0, %v1284_v40  ;;  %v591_v4 = vmul.f32 %v583_v62, %v567_v54  ;;  %v462_v20 = vadd.f32 %v454_v17, %v412_v56  ;;  %v1286_v32 = vpop.eup %1285 }
 0x1b6   :  { %v632_v0 = vadd.f32 1.0, %v1286_v32 }
 0x1b7   :  { %v1714_v25 = vmul.f32 %v635_v51, %v579_v63  ;;  %v599_v13 = vmul.f32 %v591_v4, %v567_v54 }
 0x1b8   :  { %v1730_v49 = vmul.f32 %v632_v0, %v576_v30 }
 0x1b9   :  { %661 = vmatpush.msra.mxu0 %v1714_v25  ;;  %v607_v27 = vadd.f32 %v599_v13, %v567_v54 }
 0x1bb   :  { %v548_v33 = vpop.permute.xlu1 %547  ;;  %662 = vmatpush.msra.mxu0 %v1717_v8  ;;  %v615_v7 = vmul.f32 0.7978846, %v607_v27 }
 0x1bc   :  { %v569_v41 = vadd.f32 %v548_v33, %v529_v39 }
 0x1bd   :  { %1287 = vtanh.f32 %v615_v7 }
 0x1be   :  { %v585_v23 = vmul.f32 0.044715, %v569_v41  ;;  %v577_v19 = vmul.f32 0.5, %v569_v41 }
 0x1c0   :  { %v593_v47 = vmul.f32 %v585_v23, %v569_v41  ;;  %v1337_v23 = vmov 64  }
 0x1c1   :  { %1271 = vset.pattern.permute.xlu1 %v1337_v23 }
 0x1c2   :  { %v601_v31 = vmul.f32 %v593_v47, %v569_v41 }
 0x1c3   :  { %v1288_v42 = vpop.eup %1287 }
 0x1c4   :  { %v609_v37 = vadd.f32 %v601_v31, %v569_v41  ;;  %v631_v48 = vadd.f32 1.0, %v1288_v42  ;;  %v720_v41 = vld [vmem:[%s1809_s1 + $0x18] sm:$0xf] }
 0x1c5   :  { %723 = vperm.xlu1 %1271, %v720_v41  }
 0x1c6   :  { %v617_v43 = vmul.f32 0.7978846, %v609_v37  ;;  %v1733_v26 = vmul.f32 %v631_v48, %v575_v1 }
 0x1c8   :  { %1289 = vtanh.f32 %v617_v43 }
 0x1cb   :  { %v476_v2 = vpop.permute.xlu1 %475 }
 0x1cc   :  { %v526_v21 = vmul.f32 %v476_v2, %v462_v20 }
 0x1cd   :  { %1274 = vset.pattern.permute.xlu1 %v1323_v9 }
 0x1ce   :  { %v1290_v18 = vpop.eup %1289  ;;  %v566_v10 = vadd.f32 %v536_v46, %v526_v21 }
 0x1cf   :  { %v633_v60 = vadd.f32 1.0, %v1290_v18 }
 0x1d0   :  { %v582_v44 = vmul.f32 0.044715, %v566_v10  ;;  %v574_v52 = vmul.f32 0.5, %v566_v10 }
 0x1d1   :  { %v1727_v29 = vmul.f32 %v633_v60, %v577_v19 }
 0x1d2   :  { %v590_v14 = vmul.f32 %v582_v44, %v566_v10 }
 0x1d3   :  { %663 = vmatpush.msra.mxu0 %v1727_v29 }
 0x1d4   :  { %v598_v50 = vmul.f32 %v590_v14, %v566_v10 }
 0x1d5   :  { %664 = vmatpush.msra.mxu0 %v1730_v49 }
 0x1d6   :  { %v606_v61 = vadd.f32 %v598_v50, %v566_v10 }
 0x1d7   :  { %665 = vmatpush.msra.mxu0 %v1733_v26 }
 0x1d8   :  { %v614_v34 = vmul.f32 0.7978846, %v606_v61 }
 0x1da   :  { %1291 = vtanh.f32 %v614_v34 }
 0x1e0   :  { %v1292_v24 = vpop.eup %1291 }
 0x1e1   :  { %v630_v6 = vadd.f32 1.0, %v1292_v24  ;;  %v757_v24 = vld [vmem:[%s1809_s1 + $0x20] sm:$0x1f] }
 0x1e3   :  { %v638_v53 = vmul.f32 %v630_v6, %v574_v52  ;;  %v761_v52 = vld [vmem:[%s1809_s1 + $0x28] sm:$0x1f] }
 0x1e5   :  { %666 = vmatpush.msra.mxu0 %v638_v53 }
 0x1e6   :  { %1109 = vmatmul.msk.f32.vlgmr.msra.gmra.mxu0 %vm647_vm0, %v646_v28 }
 0x237   :  { %v724_v0 = vpop.permute.xlu1 %723 }
 0x263   :  { %v668_v54 = vpop.f32.mrf.mxu0 }
 0x264   :  { %v671_v55 = vrot.slane %v668_v54, 4 }
 0x266   :  { %v672_v57 = vmax.f32 %v668_v54, %v671_v55 }
 0x268   :  { %v673_v58 = vrot.slane %v672_v57, 2 }
 0x26a   :  { %v674_v62 = vmax.f32 %v672_v57, %v673_v58  ;;  %v769_v58 = vld [vmem:[%s1809_s1 + $0x38] sm:$0x1f] }
 0x26c   :  { %v675_v40 = vrot.slane %v674_v62, 1 }
 0x26e   :  { %v676_v63 = vmax.f32 %v674_v62, %v675_v40 }
 0x270   :  { %v677_v51 = vsub.f32 %v668_v54, %v676_v63 }
 0x272   :  { %v678_v36 = vmul.f32 1.442695, %v677_v51 }
 0x274   :  { %1293 = vpow2.f32 %v678_v36 }
 0x27a   :  { %v1294_v35 = vpop.eup %1293 }
 0x27b   :  { %v680_v3 = vrot.slane %v1294_v35, 4 }
 0x27d   :  { %v681_v4 = vadd.f32 %v1294_v35, %v680_v3  ;;  %v903_v3 = vld [vmem:[%s1809_s1 + $0x68] sm:$0xff] }
 0x27f   :  { %v682_v39 = vrot.slane %v681_v4, 2 }
 0x281   :  { %v683_v5 = vadd.f32 %v682_v39, %v681_v4  ;;  %v901_v4 = vld [vmem:[%s1809_s1 + $0x58] sm:$0xff]  ;;  %v902_v39 = vld [vmem:[%s1809_s1 + $0x60] sm:$0xff] }
 0x283   :  { %v684_v33 = vrot.slane %v683_v5, 1 }
 0x285   :  { %v685_v13 = vadd.f32 %v684_v33, %v683_v5  ;;  %v899_v5 = vld [vmem:[%s1809_s1 + $0x48] sm:$0xff]  ;;  %v905_v33 = vld [vmem:[%s1809_s1 + $0x78] sm:$0xff] }
 0x286   :  { %943 = vperm.xlu0 %1273, %v905_v33  }
 0x287   :  { %1295 = vrcp.f32 %v685_v13  ;;  %v898_v13 = vld [vmem:[%s1809_s1 + $0x40] sm:$0xff] }
 0x28d   :  { %v1296_v15 = vpop.eup %1295 }
 0x28e   :  { %v687_v27 = vmul.f32 %v1296_v15, %v1294_v35  ;;  %v904_v35 = vld [vmem:[%s1809_s1 + $0x70] sm:$0xff] }
 0x28f   :  { %938 = vperm.xlu1 %1274, %v904_v35  }
 0x290   :  { %v695_v47 = vrot.slane %v687_v27, 7  ;;  %v694_v31 = vrot.slane %v687_v27, 6  ;;  %v693_v11 = vrot.slane %v687_v27, 5  ;;  %v692_v59 = vrot.slane %v687_v27, 4 }
 0x291   :  { %v691_v17 = vrot.slane %v687_v27, 3  ;;  %v690_v20 = vrot.slane %v687_v27, 2  ;;  %v689_v21 = vrot.slane %v687_v27, 1  ;;  %v696_v19 = vperm.slane %v687_v27, 0 }
 0x292   :  { %v703_v7 = vperm.slane %v695_v47, 0  ;;  %v702_v45 = vperm.slane %v694_v31, 0  ;;  %v701_v16 = vperm.slane %v693_v11, 0  ;;  %v700_v56 = vperm.slane %v692_v59, 0  ;;  %v900_v47 = vld [vmem:[%s1809_s1 + $0x50] sm:$0xff] }
 0x293   :  { %v699_v32 = vperm.slane %v691_v17, 0  ;;  %v698_v46 = vperm.slane %v690_v20, 0  ;;  %v712_v60 = vmul.f32 %v696_v19, %v638_v53  ;;  %918 = vperm.xlu0 %1273, %v900_v47  }
 0x294   :  { %v719_v37 = vmul.f32 %v703_v7, %v1700_v12  ;;  %v718_v43 = vmul.f32 %v702_v45, %v1703_v22  ;;  %v717_v2 = vmul.f32 %v701_v16, %v1714_v25  ;;  %v716_v42 = vmul.f32 %v700_v56, %v1717_v8 }
 0x295   :  { %v715_v18 = vmul.f32 %v699_v32, %v1727_v29  ;;  %v697_v12 = vperm.slane %v689_v21, 0  ;;  %v714_v10 = vmul.f32 %v698_v46, %v1730_v49  ;;  %v791_v25 = vand.u32 127, %v471_v38  ;;  %v872_v29 = vld [vmem:[%s1809_s1 + $0x88] sm:$0x1f] }
 0x296   :  { %736 = vmatpush.msra.mxu1 %v719_v37  ;;  %v1338_v8 = vmov 1.0   ;;  %875 = vperm.xlu2 %1272, %v872_v29  }
 0x297   :  { %v713_v22 = vmul.f32 %v697_v12, %v1733_v26  ;;  %vm1119_vm1 = vcmp.eq.s32.totalorder %v791_v25, 1  ;;  %vm1111_vm2 = vcmp.eq.s32.totalorder %v791_v25, 0  ;;  %928 = vperm.xlu1 %1274, %v902_v39  }
 0x298   :  { %737 = vmatpush.msra.mxu1 %v718_v43  ;;  %1143 = vmatpush.msk.msra.mxu2 %vm1119_vm1, %v1338_v8 }
 0x29a   :  { %738 = vmatpush.msra.mxu1 %v717_v2  ;;  %1144 = vmatpush.msk.msra.mxu2 %vm1119_vm1, %v1338_v8 }
 0x29b   :  { %1276 = vset.pattern.permute.xlu0 %v1337_v23 }
 0x29c   :  { %739 = vmatpush.msra.mxu1 %v716_v42  ;;  %1145 = vmatpush.msk.msra.mxu2 %vm1119_vm1, %v1338_v8 }
 0x29e   :  { %740 = vmatpush.msra.mxu1 %v715_v18  ;;  %1146 = vmatpush.msk.msra.mxu2 %vm1119_vm1, %v1338_v8 }
 0x29f   :  { %1275 = vset.pattern.permute.xlu2 %v1323_v9  ;;  %v765_v9 = vld [vmem:[%s1809_s1 + $0x30] sm:$0x1f]  ;;  %913 = vperm.xlu1 %1274, %v899_v5  }
 0x2a0   :  { %741 = vmatpush.msra.mxu1 %v714_v10  ;;  %1147 = vmatpush.msk.msra.mxu2 %vm1119_vm1, %v1338_v8  ;;  %v1798_v10 = vld [vmem:[%s1809_s1 + $0x80] sm:$0xf] }
 0x2a1   :  { %933 = vperm.xlu2 %1275, %v903_v3   ;;  %1059 = vperm.xlu0 %1276, %v1798_v10  }
 0x2a2   :  { %742 = vmatpush.msra.mxu1 %v713_v22  ;;  %1148 = vmatpush.msk.msra.mxu2 %vm1119_vm1, %v1338_v8 }
 0x2a4   :  { %743 = vmatpush.msra.mxu1 %v712_v60  ;;  %1149 = vmatpush.msk.msra.mxu2 %vm1119_vm1, %v1338_v8 }
 0x2a5   :  { %1110 = vmatmul.msk.f32.vlgmr.msra.gmra.mxu1 %vm647_vm0, %v720_v41 }
 0x2a6   :  { %1150 = vmatpush.msk.msra.mxu2 %vm1119_vm1, %v1338_v8 }
 0x2a8   :  { %1151 = vmatpush.msk.msra.mxu2 %vm1111_vm2, %v1338_v8 }
 0x2a9   :  { %923 = vperm.xlu2 %1275, %v901_v4  }
 0x2aa   :  { %1152 = vmatpush.msk.msra.mxu2 %vm1111_vm2, %v1338_v8 }
 0x2ac   :  { %1153 = vmatpush.msk.msra.mxu2 %vm1111_vm2, %v1338_v8 }
 0x2ae   :  { %1154 = vmatpush.msk.msra.mxu2 %vm1111_vm2, %v1338_v8 }
 0x2b0   :  { %1155 = vmatpush.msk.msra.mxu2 %vm1111_vm2, %v1338_v8 }
 0x2b1   :  { %908 = vperm.xlu2 %1275, %v898_v13  }
 0x2b2   :  { %1156 = vmatpush.msk.msra.mxu2 %vm1111_vm2, %v1338_v8 }
 0x2b4   :  { %1157 = vmatpush.msk.msra.mxu2 %vm1111_vm2, %v1338_v8 }
 0x2b6   :  { %1158 = vmatpush.msk.msra.mxu2 %vm1111_vm2, %v1338_v8 }
 0x2f0   :  { %v876_v41 = vpop.permute.xlu2 %875 }
 0x2f8   :  { %v944_v16 = vpop.permute.xlu0 %943 }
 0x2fb   :  { %v934_v59 = vpop.permute.xlu2 %933 }
 0x301   :  { %v939_v45 = vpop.permute.xlu1 %938 }
 0x303   :  { %v924_v20 = vpop.permute.xlu2 %923 }
 0x305   :  { %v919_v46 = vpop.permute.xlu0 %918 }
 0x309   :  { %v929_v43 = vpop.permute.xlu1 %928 }
 0x30b   :  { %v909_v25 = vpop.permute.xlu2 %908 }
 0x311   :  { %v914_v19 = vpop.permute.xlu1 %913 }
 0x322   :  { %v745_v44 = vpop.f32.mrf.mxu1 }
 0x323   :  { %v746_v38 = vadd.f32 %v745_v44, %v724_v0 }
 0x325   :  { %v749_v30 = vmul.f32 0.044715, %v746_v38  ;;  %v748_v26 = vmul.f32 0.5, %v746_v38 }
 0x327   :  { %v750_v48 = vmul.f32 %v749_v30, %v746_v38 }
 0x329   :  { %v751_v14 = vmul.f32 %v750_v48, %v746_v38 }
 0x32b   :  { %v752_v49 = vadd.f32 %v751_v14, %v746_v38 }
 0x32d   :  { %v753_v1 = vmul.f32 0.7978846, %v752_v49 }
 0x32f   :  { %1297 = vtanh.f32 %v753_v1 }
 0x335   :  { %v1298_v50 = vpop.eup %1297 }
 0x336   :  { %v755_v61 = vadd.f32 1.0, %v1298_v50 }
 0x338   :  { %v756_v34 = vmul.f32 %v755_v61, %v748_v26 }
 0x33a   :  { %v758_v6 = vperm.slane %v756_v34, 0  ;;  %v762_v53 = vperm.slane %v756_v34, 1  ;;  %v766_v28 = vperm.slane %v756_v34, 2  ;;  %v770_v57 = vperm.slane %v756_v34, 3 }
 0x33c   :  { %v759_v54 = vmul.f32 %v758_v6, %v757_v24  ;;  %v763_v55 = vmul.f32 %v762_v53, %v761_v52  ;;  %v767_v40 = vmul.f32 %v766_v28, %v765_v9  ;;  %v771_v51 = vmul.f32 %v770_v57, %v769_v58 }
 0x33e   :  { %v764_v62 = vadd.f32 %v763_v55, %v759_v54 }
 0x340   :  { %v768_v63 = vadd.f32 %v767_v40, %v764_v62 }
 0x342   :  { %v772_v36 = vadd.f32 %v771_v51, %v768_v63 }
 0x344   :  { %894 = vmatmul.f32.vlgmr.msra.gmra.mxu2 %v772_v36 }
 0x3c7   :  { %v895_v15 = vpop.f32.mrf.mxu2 }
 0x3c8   :  { %v896_v27 = vadd.f32 %v895_v15, %v876_v41 }
 0x3ca   :  { %1159 = vmatpush.msk.msrb.mxu1 %vm963_vm3, %v896_v27  ;;  %1177 = vmatpush.msk.msra.mxu3 %vm963_vm3, %v896_v27 }
 0x3cb   :  { %1163 = vmatmul.msk.f32.vlgmr.msra.gmra.mxu3 %vm946_vm4, %v901_v4  ;;  %1160 = vmatmul.msk.f32.vlgmr.msrb.gmra.mxu1 %vm946_vm4, %v898_v13 }
 0x3d3   :  { %1164 = vmatmul.msk.f32.gmra.mxu3 %vm946_vm4, %v902_v39  ;;  %1161 = vmatmul.msk.f32.gmra.mxu1 %vm946_vm4, %v899_v5 }
 0x3db   :  { %1165 = vmatmul.msk.f32.gmra.mxu3 %vm946_vm4, %v903_v3  ;;  %1162 = vmatmul.msk.f32.gmra.mxu1 %vm946_vm4, %v900_v47 }
 0x3e3   :  { %1166 = vmatmul.msk.f32.gmra.mxu3 %vm946_vm4, %v904_v35 }
 0x3eb   :  { %1167 = vmatmul.msk.f32.gmra.mxu3 %vm946_vm4, %v905_v33 }
 0x448   :  { %v984_v7 = vpop.f32.mrf.mxu1 }
 0x449   :  { %v985_v14 = vadd.f32 %v984_v7, %v909_v25 }
 0x44b   :  { %v1016_v34 = vmin.f32 %v985_v14, 0.0  ;;  %vm1008_vm12 = vcmp.gt.f32.partialorder %v985_v14, 0.0 }
 0x44d   :  { %v1024_v9 = vmul.f32 1.442695, %v1016_v34 }
 0x44e   :  { %v993_v31 = vpop.f32.mrf.mxu3 }
 0x44f   :  { %v994_v12 = vadd.f32 %v993_v31, %v924_v20 }
 0x450   :  { %v987_v17 = vpop.f32.mrf.mxu1 }
 0x451   :  { %v1019_v29 = vmin.f32 %v994_v12, 0.0  ;;  %v988_v30 = vadd.f32 %v987_v17, %v914_v19  ;;  %vm1011_vm9 = vcmp.gt.f32.partialorder %v994_v12, 0.0 }
 0x453   :  { %v1030_v26 = vmul.f32 1.442695, %v1019_v29  ;;  %v1017_v61 = vmin.f32 %v988_v30, 0.0  ;;  %vm1009_vm11 = vcmp.gt.f32.partialorder %v988_v30, 0.0 }
 0x455   :  { %v1026_v6 = vmul.f32 1.442695, %v1017_v61 }
 0x456   :  { %v996_v11 = vpop.f32.mrf.mxu3 }
 0x457   :  { %v997_v21 = vadd.f32 %v996_v11, %v929_v43  ;;  %v1060_v11 = vpop.permute.xlu0 %1059 }
 0x458   :  { %v990_v18 = vpop.f32.mrf.mxu1 }
 0x459   :  { %v1020_v60 = vmin.f32 %v997_v21, 0.0  ;;  %v991_v8 = vadd.f32 %v990_v18, %v919_v46  ;;  %vm1012_vm8 = vcmp.gt.f32.partialorder %v997_v21, 0.0 }
 0x45b   :  { %v1032_v49 = vmul.f32 1.442695, %v1020_v60  ;;  %v1018_v1 = vmin.f32 %v991_v8, 0.0  ;;  %vm1010_vm10 = vcmp.gt.f32.partialorder %v991_v8, 0.0 }
 0x45d   :  { %v1028_v24 = vmul.f32 1.442695, %v1018_v1 }
 0x45e   :  { %v999_v37 = vpop.f32.mrf.mxu3 }
 0x45f   :  { %v1000_v32 = vadd.f32 %v999_v37, %v934_v59 }
 0x461   :  { %v1021_v23 = vmin.f32 %v1000_v32, 0.0  ;;  %vm1013_vm7 = vcmp.gt.f32.partialorder %v1000_v32, 0.0 }
 0x463   :  { %v1034_v38 = vmul.f32 1.442695, %v1021_v23 }
 0x466   :  { %v1002_v56 = vpop.f32.mrf.mxu3 }
 0x467   :  { %v1003_v2 = vadd.f32 %v1002_v56, %v939_v45 }
 0x469   :  { %v1022_v42 = vmin.f32 %v1003_v2, 0.0  ;;  %vm1014_vm6 = vcmp.gt.f32.partialorder %v1003_v2, 0.0 }
 0x46b   :  { %v1036_v0 = vmul.f32 1.442695, %v1022_v42 }
 0x46d   :  { %1299 = vpow2.f32 %v1036_v0 }
 0x46e   :  { %v1005_v22 = vpop.f32.mrf.mxu3  ;;  %1301 = vpow2.f32 %v1034_v38 }
 0x46f   :  { %v1006_v44 = vadd.f32 %v1005_v22, %v944_v16 }
 0x471   :  { %v1023_v48 = vmin.f32 %v1006_v44, 0.0  ;;  %vm1015_vm5 = vcmp.gt.f32.partialorder %v1006_v44, 0.0 }
 0x473   :  { %v1038_v50 = vmul.f32 1.442695, %v1023_v48  ;;  %v1300_v52 = vpop.eup %1299 }
 0x474   :  { %v1302_v53 = vpop.eup %1301  ;;  %v1174_v55 = vadd.f32 -1.0, %v1300_v52 }
 0x475   :  { %1303 = vpow2.f32 %v1038_v50  ;;  %v1173_v62 = vadd.f32 -1.0, %v1302_v53 }
 0x476   :  { %1305 = vpow2.f32 %v1032_v49  ;;  %v1054_v63 = vsel %vm1014_vm6, %v1003_v2, %v1174_v55 }
 0x477   :  { %1307 = vpow2.f32 %v1030_v26  ;;  %v1053_v35 = vsel %vm1013_vm7, %v1000_v32, %v1173_v62 }
 0x478   :  { %1309 = vpow2.f32 %v1028_v24 }
 0x479   :  { %1311 = vpow2.f32 %v1026_v6 }
 0x47a   :  { %1313 = vpow2.f32 %v1024_v9 }
 0x47b   :  { %v1304_v28 = vpop.eup %1303 }
 0x47c   :  { %v1175_v54 = vadd.f32 -1.0, %v1304_v28  ;;  %v1306_v57 = vpop.eup %1305 }
 0x47d   :  { %v1308_v40 = vpop.eup %1307  ;;  %v1172_v51 = vadd.f32 -1.0, %v1306_v57 }
 0x47e   :  { %v1055_v58 = vsel %vm1015_vm5, %v1006_v44, %v1175_v54  ;;  %v1310_v36 = vpop.eup %1309  ;;  %v1171_v3 = vadd.f32 -1.0, %v1308_v40 }
 0x47f   :  { %1072 = vmatpush.msrb.mxu0 %v1055_v58  ;;  %v1312_v4 = vpop.eup %1311  ;;  %v1052_v39 = vsel %vm1012_vm8, %v997_v21, %v1172_v51  ;;  %v1170_v5 = vadd.f32 -1.0, %v1310_v36 }
 0x480   :  { %v1314_v33 = vpop.eup %1313  ;;  %v1051_v13 = vsel %vm1011_vm9, %v994_v12, %v1171_v3  ;;  %v1169_v41 = vadd.f32 -1.0, %v1312_v4 }
 0x481   :  { %1073 = vmatpush.msrb.mxu0 %v1054_v63  ;;  %v1050_v15 = vsel %vm1010_vm10, %v991_v8, %v1170_v5  ;;  %v1168_v27 = vadd.f32 -1.0, %v1314_v33 }
 0x482   :  { %v1049_v47 = vsel %vm1009_vm11, %v988_v30, %v1169_v41 }
 0x483   :  { %1074 = vmatpush.msrb.mxu0 %v1053_v35  ;;  %v1048_v31 = vsel %vm1008_vm12, %v985_v14, %v1168_v27 }
 0x485   :  { %1075 = vmatpush.msrb.mxu0 %v1052_v39 }
 0x487   :  { %1076 = vmatpush.msrb.mxu0 %v1051_v13 }
 0x489   :  { %1077 = vmatpush.msrb.mxu0 %v1050_v15 }
 0x48b   :  { %1078 = vmatpush.msrb.mxu0 %v1049_v47 }
 0x48d   :  { %1079 = vmatpush.msrb.mxu0 %v1048_v31 }
 0x48e   :  { %1176 = vmatmul.msk.f32.vlgmr.msrb.gmra.mxu0 %vm647_vm0, %v1798_v10 }
 0x50b   :  { %v1081_v7 = vpop.f32.mrf.mxu0 }
 0x50c   :  { %v1082_v45 = vadd.f32 %v1081_v7, %v1060_v11 }
 0x50e   :  { %v1085_v59 = vsel %vm1084_vm13, %v1082_v45, -inf }
 0x50f   :  { %v1086_v37 = vrot.slane %v1085_v59, 4 }
 0x511   :  { %v1087_v16 = vmax.f32 %v1085_v59, %v1086_v37 }
 0x513   :  { %v1088_v17 = vrot.slane %v1087_v16, 2 }
 0x515   :  { %v1089_v43 = vmax.f32 %v1087_v16, %v1088_v17 }
 0x517   :  { %v1090_v56 = vrot.slane %v1089_v43, 1 }
 0x519   :  { %v1091_v20 = vmax.f32 %v1089_v43, %v1090_v56 }
 0x51b   :  { %v1092_v2 = vsub.f32 %v1082_v45, %v1091_v20 }
 0x51d   :  { %v1093_v32 = vmul.f32 1.442695, %v1092_v2 }
 0x51f   :  { %1315 = vpow2.f32 %v1093_v32 }
 0x525   :  { %v1316_v21 = vpop.eup %1315 }
 0x526   :  { %v1095_v42 = vsel %vm1084_vm13, %v1316_v21, 0.0 }
 0x527   :  { %v1096_v23 = vrot.slane %v1095_v42, 4 }
 0x529   :  { %v1097_v46 = vadd.f32 %v1096_v23, %v1095_v42 }
 0x52b   :  { %v1098_v18 = vrot.slane %v1097_v46, 2 }
 0x52d   :  { %v1099_v12 = vadd.f32 %v1098_v18, %v1097_v46 }
 0x52f   :  { %v1100_v10 = vrot.slane %v1099_v12, 1 }
 0x531   :  { %v1101_v19 = vadd.f32 %v1100_v10, %v1099_v12 }
 0x533   :  { %1317 = vrcp.f32 %v1101_v19 }
 0x539   :  { %v1318_v22 = vpop.eup %1317 }
 0x53a   :  { %v1103_v60 = vmul.f32 %v1318_v22, %v1316_v21 }
 0x53c   :  { %1104 = vst.msk [vmem:[%s1811_s2] sm:$0xf] %vm1084_vm13, %v1103_v60 }

</bundles_post_ra>
